<compile_context>
chip_gen: v7x
topology: tpu7x:2x2x1
jax: 0.10.0
libtpu: 0.0.40
codegen_flags: <defaults>
</compile_context>

<pallas_src>
import math
from functools import partial

import jax
import jax.numpy as jnp
from jax.experimental import pallas as pl
from jax.experimental.pallas import tpu as pltpu

COMPUTE_DTYPE = jnp.bfloat16          # MXU-native dtype for weights / inter-kernel activations
VMEM_LIMIT = 48 * 1024 * 1024         # below v7x's 64 MiB physical; raises v5e/v6e scoped default

_GELU_C = math.sqrt(2.0 / math.pi)


def _gelu_tanh(x):
    # tanh-approx GELU: the transcendental lands on the otherwise-idle EUP slot.
    # TODO(synk): PyTorch activation='gelu' is the exact erf form; tanh approx differs by <~1e-3.
    return 0.5 * x * (1.0 + jnp.tanh(_GELU_C * (x + 0.044715 * x * x * x)))


# ------------------------------- tiling helpers --------------------------------

def _round_up(x, m):
    return (x + m - 1) // m * m


def _choose_tile(dim, target, align):
    """Pick a (8,128)-legal tile and the (possibly padded) dim it tiles.

    Returns (tile, padded_dim). If the dim fits in one tile, use the full extent (always
    legal). Otherwise prefer an aligned divisor of dim; if none exists, pad the dim up to a
    multiple of the aligned target tile (no full-dim or tiny-tile fallbacks).
    """
    if dim <= target:
        return dim, dim
    t = (target // align) * align
    d = t
    while d >= align:
        if dim % d == 0:
            return d, dim
        d -= align
    return t, _round_up(dim, t)


def _pick_divisor(dim, target, align):
    """Largest aligned divisor of dim <= target; else the full dim (single block)."""
    if dim <= target or dim % align != 0:
        return dim
    t = (target // align) * align
    while t >= align:
        if dim % t == 0:
            return t
        t -= align
    return dim


def _pad_axis(a, axis, new_size):
    if a.shape[axis] == new_size:
        return a
    pad = [(0, 0)] * a.ndim
    pad[axis] = (0, new_size - a.shape[axis])
    return jnp.pad(a, pad)


# --------------------------- tiled linear (+ GELU) -----------------------------

def _linear_kernel(x_ref, w_ref, b_ref, o_ref, acc_ref, *, activation):
    @pl.when(pl.program_id(2) == 0)
    def _():
        acc_ref[...] = jnp.zeros_like(acc_ref)

    # bf16 x bf16 -> f32 accumulation on the MXU.
    acc_ref[...] += jnp.dot(x_ref[...], w_ref[...], preferred_element_type=jnp.float32)

    @pl.when(pl.program_id(2) == pl.num_programs(2) - 1)
    def _():
        y = acc_ref[...] + b_ref[...]            # f32 epilogue
        if activation == "gelu":
            y = _gelu_tanh(y)
        o_ref[...] = y.astype(o_ref.dtype)


def pallas_linear(x2d, w, b, activation=None, out_dtype=COMPUTE_DTYPE,
                  *, tm=512, tn=512, tk=512):
    M, K = x2d.shape
    N = w.shape[1]
    tm, Mp = _choose_tile(M, tm, 8)
    tn, Np = _choose_tile(N, tn, 128)
    tk, Kp = _choose_tile(K, tk, 128)

    xb = _pad_axis(_pad_axis(x2d.astype(COMPUTE_DTYPE), 0, Mp), 1, Kp)
    wb = _pad_axis(_pad_axis(w.astype(COMPUTE_DTYPE), 0, Kp), 1, Np)
    bf = _pad_axis(b.astype(jnp.float32), 0, Np).reshape(1, Np)

    grid = (Mp // tm, Np // tn, Kp // tk)
    out_bytes = Mp * Np * jnp.dtype(out_dtype).itemsize
    cost = pl.CostEstimate(
        flops=2 * Mp * Np * Kp,
        transcendentals=Mp * Np if activation == "gelu" else 0,
        bytes_accessed=2 * (Mp * Kp + Kp * Np) + 4 * Np + out_bytes)

    out = pl.pallas_call(
        partial(_linear_kernel, activation=activation),
        out_shape=jax.ShapeDtypeStruct((Mp, Np), out_dtype),
        grid_spec=pltpu.PrefetchScalarGridSpec(
            num_scalar_prefetch=0,
            grid=grid,
            in_specs=[
                pl.BlockSpec((tm, tk), lambda i, j, k: (i, k)),
                pl.BlockSpec((tk, tn), lambda i, j, k: (k, j)),
                pl.BlockSpec((1, tn), lambda i, j, k: (0, j)),
            ],
            out_specs=pl.BlockSpec((tm, tn), lambda i, j, k: (i, j)),
            scratch_shapes=[pltpu.VMEM((tm, tn), jnp.float32)],
        ),
        compiler_params=pltpu.CompilerParams(
            dimension_semantics=("parallel", "parallel", "arbitrary"),
            vmem_limit_bytes=VMEM_LIMIT),
        cost_estimate=cost,
    )(xb, wb, bf)
    if (Mp, Np) != (M, N):
        out = out[:M, :N]
    return out


# --------------- tiled linear + residual add + LayerNorm (fused) ---------------

def _linear_res_ln_kernel(x_ref, w_ref, b_ref, r_ref, g_ref, bb_ref, o_ref, acc_ref, *, eps):
    @pl.when(pl.program_id(1) == 0)
    def _():
        acc_ref[...] = jnp.zeros_like(acc_ref)

    acc_ref[...] += jnp.dot(x_ref[...], w_ref[...], preferred_element_type=jnp.float32)

    @pl.when(pl.program_id(1) == pl.num_programs(1) - 1)
    def _():
        # LayerNorm(residual + (x @ w + b)) in f32, PyTorch-style biased variance.
        y = acc_ref[...] + b_ref[...] + r_ref[...].astype(jnp.float32)
        mu = jnp.mean(y, axis=-1, keepdims=True)
        d = y - mu
        var = jnp.mean(d * d, axis=-1, keepdims=True)
        inv = jax.lax.rsqrt(var + eps)
        o_ref[...] = (d * inv * g_ref[...] + bb_ref[...]).astype(o_ref.dtype)


def pallas_linear_residual_layernorm(x2d, w, b, resid, gamma, beta, *, eps=1e-5,
                                     out_dtype=COMPUTE_DTYPE, tm=256, tk=512):
    M, K = x2d.shape
    H = w.shape[1]                      # output width kept full (LayerNorm reduces over it)
    tm, Mp = _choose_tile(M, tm, 8)
    tk, Kp = _choose_tile(K, tk, 128)

    xb = _pad_axis(_pad_axis(x2d.astype(COMPUTE_DTYPE), 0, Mp), 1, Kp)
    wb = _pad_axis(w.astype(COMPUTE_DTYPE), 0, Kp)
    rb = _pad_axis(resid.astype(COMPUTE_DTYPE), 0, Mp)
    bf = b.astype(jnp.float32).reshape(1, H)
    gf = gamma.astype(jnp.float32).reshape(1, H)
    betaf = beta.astype(jnp.float32).reshape(1, H)

    grid = (Mp // tm, Kp // tk)
    cost = pl.CostEstimate(
        flops=2 * Mp * H * Kp + 10 * Mp * H,
        transcendentals=Mp,             # rsqrt per row
        bytes_accessed=2 * (Mp * Kp + Kp * H + Mp * H) + 12 * H
                       + Mp * H * jnp.dtype(out_dtype).itemsize)

    out = pl.pallas_call(
        partial(_linear_res_ln_kernel, eps=eps),
        out_shape=jax.ShapeDtypeStruct((Mp, H), out_dtype),
        grid_spec=pltpu.PrefetchScalarGridSpec(
            num_scalar_prefetch=0,
            grid=grid,
            in_specs=[
                pl.BlockSpec((tm, tk), lambda i, k: (i, k)),
                pl.BlockSpec((tk, H), lambda i, k: (k, 0)),
                pl.BlockSpec((1, H), lambda i, k: (0, 0)),
                pl.BlockSpec((tm, H), lambda i, k: (i, 0)),
                pl.BlockSpec((1, H), lambda i, k: (0, 0)),
                pl.BlockSpec((1, H), lambda i, k: (0, 0)),
            ],
            out_specs=pl.BlockSpec((tm, H), lambda i, k: (i, 0)),
            scratch_shapes=[pltpu.VMEM((tm, H), jnp.float32)],
        ),
        compiler_params=pltpu.CompilerParams(
            dimension_semantics=("parallel", "arbitrary"),
            vmem_limit_bytes=VMEM_LIMIT),
        cost_estimate=cost,
    )(xb, wb, bf, rb, gf, betaf)
    if Mp != M:
        out = out[:M]
    return out


# ------------------ flash-style multi-head self-attention ----------------------

def _flash_attn_kernel(q_ref, k_ref, v_ref, o_ref, m_sc, l_sc, acc_sc, *, scale):
    kv = pl.program_id(2)

    @pl.when(kv == 0)
    def _():
        m_sc[...] = jnp.full(m_sc.shape, -jnp.inf, m_sc.dtype)
        l_sc[...] = jnp.zeros_like(l_sc)
        acc_sc[...] = jnp.zeros_like(acc_sc)

    # Fold the softmax scale into q (O(tq*Dh) instead of O(tq*tkv)); MXU inputs stay bf16.
    q = (q_ref[0].astype(jnp.float32) * scale).astype(q_ref.dtype)
    # q @ k^T with the transpose folded into the MXU contraction (no XLU vxpose).
    s = jax.lax.dot_general(q, k_ref[0], (((1,), (1,)), ((), ())),
                            preferred_element_type=jnp.float32)          # (tq, tkv) f32

    m_prev = m_sc[...]
    m_new = jnp.maximum(m_prev, jnp.max(s, axis=-1, keepdims=True))
    alpha = jnp.exp(m_prev - m_new)
    p = jnp.exp(s - m_new)
    l_sc[...] = alpha * l_sc[...] + jnp.sum(p, axis=-1, keepdims=True)
    acc_sc[...] = alpha * acc_sc[...] + jnp.dot(
        p.astype(v_ref.dtype), v_ref[0], preferred_element_type=jnp.float32)
    m_sc[...] = m_new

    @pl.when(kv == pl.num_programs(2) - 1)
    def _():
        # Normalize AFTER the PV matmul: one O(tq*Dh) multiply, EUP reciprocal.
        o_ref[0] = (acc_sc[...] * pl.reciprocal(l_sc[...], approx=True)).astype(o_ref.dtype)


def pallas_mha(qkv, num_heads, *, tq=256, tkv=256):
    """Flash-style MHA over a (batch*head, q-block, kv-block) grid."""
    B, S, H3 = qkv.shape
    H = H3 // 3
    Dh = H // num_heads
    scale = 1.0 / math.sqrt(Dh)

    # Split heads in the wrapper: (B, S, 3H) -> (3, B*nh, S, Dh).
    qkv5 = qkv.reshape(B, S, 3, num_heads, Dh).transpose(2, 0, 3, 1, 4)
    qkv5 = qkv5.reshape(3, B * num_heads, S, Dh).astype(COMPUTE_DTYPE)
    q, k, v = qkv5[0], qkv5[1], qkv5[2]

    # TODO(synk): pad + mask the kv axis for sequence lengths without an 8-aligned divisor.
    tq = _pick_divisor(S, tq, 8)
    tkv = _pick_divisor(S, tkv, 8)
    grid = (B * num_heads, S // tq, S // tkv)

    cost = pl.CostEstimate(
        flops=4 * B * num_heads * S * S * Dh,
        transcendentals=B * num_heads * S * S,
        bytes_accessed=2 * 4 * B * num_heads * S * Dh)

    out = pl.pallas_call(
        partial(_flash_attn_kernel, scale=scale),
        out_shape=jax.ShapeDtypeStruct((B * num_heads, S, Dh), COMPUTE_DTYPE),
        grid_spec=pltpu.PrefetchScalarGridSpec(
            num_scalar_prefetch=0,
            grid=grid,
            in_specs=[
                pl.BlockSpec((1, tq, Dh), lambda b, i, j: (b, i, 0)),
                pl.BlockSpec((1, tkv, Dh), lambda b, i, j: (b, j, 0)),
                pl.BlockSpec((1, tkv, Dh), lambda b, i, j: (b, j, 0)),
            ],
            out_specs=pl.BlockSpec((1, tq, Dh), lambda b, i, j: (b, i, 0)),
            scratch_shapes=[pltpu.VMEM((tq, 1), jnp.float32),
                            pltpu.VMEM((tq, 1), jnp.float32),
                            pltpu.VMEM((tq, Dh), jnp.float32)],
        ),
        compiler_params=pltpu.CompilerParams(
            dimension_semantics=("parallel", "parallel", "arbitrary"),
            vmem_limit_bytes=VMEM_LIMIT),
        cost_estimate=cost,
    )(q, k, v)

    # (B*nh, S, Dh) -> (B, S, H) lane-dense for the out_proj GEMM.
    return out.reshape(B, num_heads, S, Dh).transpose(0, 2, 1, 3).reshape(B, S, H)


# ------------------------------ parameters / glue -------------------------------

def make_pos_encoding(d_model, max_len=5000):
    position = jnp.arange(max_len, dtype=jnp.float32)[:, None]
    div_term = jnp.exp(
        jnp.arange(0, d_model, 2, dtype=jnp.float32) * (-math.log(10000.0) / d_model))
    pe = jnp.zeros((max_len, 1, d_model), jnp.float32)
    pe = pe.at[:, 0, 0::2].set(jnp.sin(position * div_term))
    pe = pe.at[:, 0, 1::2].set(jnp.cos(position * div_term))
    return pe


def init_params(key, input_dim, hidden_dim, embedding_dim, num_heads, num_layers):
    H = hidden_dim
    ks = jax.random.split(key, 2 + num_layers)

    def lin(k, fan_in, fan_out):
        kw, kb = jax.random.split(k)
        bound = 1.0 / math.sqrt(fan_in)
        w = jax.random.uniform(kw, (fan_in, fan_out), jnp.float32, -bound, bound)
        b = jax.random.uniform(kb, (fan_out,), jnp.float32, -bound, bound)
        return w.astype(COMPUTE_DTYPE), b            # bf16 weights, f32 biases

    w_in, b_in = lin(ks[0], input_dim, H)
    w_out, b_out = lin(ks[1], H, embedding_dim)
    layers = []
    for i in range(num_layers):
        lk = jax.random.split(ks[2 + i], 4)
        w_qkv, b_qkv = lin(lk[0], H, 3 * H)          # packed q,k,v (in_proj)
        w_o, b_o = lin(lk[1], H, H)                  # attn out_proj
        w_ff1, b_ff1 = lin(lk[2], H, 4 * H)          # dim_feedforward = 4*H
        w_ff2, b_ff2 = lin(lk[3], 4 * H, H)
        layers.append(dict(
            w_qkv=w_qkv, b_qkv=b_qkv, w_o=w_o, b_o=b_o,
            w_ff1=w_ff1, b_ff1=b_ff1, w_ff2=w_ff2, b_ff2=b_ff2,
            ln1_g=jnp.ones((H,), jnp.float32), ln1_b=jnp.zeros((H,), jnp.float32),
            ln2_g=jnp.ones((H,), jnp.float32), ln2_b=jnp.zeros((H,), jnp.float32),
        ))
    return dict(w_in=w_in, b_in=b_in, w_out=w_out, b_out=b_out,
                pe=make_pos_encoding(H), layers=layers)


def transformer_encoder_forward(params, x, *, num_heads):
    B, S, _ = x.shape
    H = params["w_in"].shape[1]

    # input_proj (tiled matmul, bf16 output)
    h = pallas_linear(x.reshape(B * S, -1), params["w_in"], params["b_in"]).reshape(B, S, H)

    # PositionalEncoding: the reference indexes pe by x.size(0) = BATCH (batch_first), so
    # pe[:B] of shape (B,1,H) broadcasts over the sequence axis — reproduced faithfully.
    h = (h.astype(jnp.float32) + params["pe"][:B]).astype(COMPUTE_DTYPE)

    # TODO(synk): dropout(p=0.1) layers are inference-mode identity (eval semantics).
    for lyr in params["layers"]:
        x2 = h.reshape(B * S, H)

        # fused QKV projection -> lane-dense bf16 (B, S, 3H)
        qkv = pallas_linear(x2, lyr["w_qkv"], lyr["b_qkv"]).reshape(B, S, 3 * H)
        attn = pallas_mha(qkv, num_heads).reshape(B * S, H)

        # out_proj + residual + LayerNorm1 fused (post-LN, norm_first=False)
        h1 = pallas_linear_residual_layernorm(
            attn, lyr["w_o"], lyr["b_o"], x2, lyr["ln1_g"], lyr["ln1_b"])

        # FF1 with GELU epilogue fused; the (B*S, 4H) intermediate stays bf16 in HBM
        f = pallas_linear(h1, lyr["w_ff1"], lyr["b_ff1"], activation="gelu")

        # FF2 + residual + LayerNorm2 fused
        h = pallas_linear_residual_layernorm(
            f, lyr["w_ff2"], lyr["b_ff2"], h1, lyr["ln2_g"], lyr["ln2_b"]).reshape(B, S, H)

    # output_proj (f32 output)
    out = pallas_linear(h.reshape(B * S, H), params["w_out"], params["b_out"],
                        out_dtype=jnp.float32)
    return out.reshape(B, S, -1)


if __name__ == "__main__":
    B, S = 2, 8
    input_dim, hidden_dim, embedding_dim = 16, 32, 24
    num_heads, num_layers = 8, 2

    key = jax.random.PRNGKey(0)
    pkey, xkey = jax.random.split(key)
    params = init_params(pkey, input_dim, hidden_dim, embedding_dim, num_heads, num_layers)
    x = jax.random.normal(xkey, (B, S, input_dim), jnp.float32)

    fwd = jax.jit(partial(transformer_encoder_forward, num_heads=num_heads))
    out = fwd(params, x)
    jax.block_until_ready(out)
    assert out.shape == (B, S, embedding_dim), out.shape
    assert bool(jnp.all(jnp.isfinite(out)))
    print("KERNEL_OK")
</pallas_src>

<mosaic_0001>
module attributes {stable_mosaic.version = 11 : i64} {
  func.func @_linear_kernel(%arg0: i32, %arg1: i32, %arg2: i32, %arg3: memref<16x16xbf16, #tpu.memory_space<vmem>>, %arg4: memref<16x32xbf16, #tpu.memory_space<vmem>>, %arg5: memref<1x32xf32, #tpu.memory_space<vmem>>, %arg6: memref<16x32xbf16, #tpu.memory_space<vmem>>, %arg7: memref<16x32xf32, #tpu.memory_space<vmem>>) attributes {dimension_semantics = [#tpu.dimension_semantics<parallel>, #tpu.dimension_semantics<parallel>, #tpu.dimension_semantics<arbitrary>], iteration_bounds = array<i64: 1, 1, 1>, scalar_prefetch = 0 : i64, scratch_operands = 1 : i64, tpu.core_type = #tpu.core_type<tc>, window_params = [{transform_indices = @transform_0, window_bounds = array<i64: 16, 16>}, {transform_indices = @transform_1, window_bounds = array<i64: 16, 32>}, {transform_indices = @transform_2, window_bounds = array<i64: 1, 32>}, {transform_indices = @transform_3, window_bounds = array<i64: 16, 32>}]} {
    %c0_i32 = arith.constant 0 : i32
    %0 = arith.cmpi eq, %arg2, %c0_i32 : i32
    %1 = arith.extui %0 : i1 to i32
    %c0_i32_0 = arith.constant 0 : i32
    %2 = arith.cmpi ne, %1, %c0_i32_0 : i32
    scf.if %2 {
      %cst_10 = arith.constant 0.000000e+00 : f32
      %12 = vector.broadcast %cst_10 : f32 to vector<16x32xf32>
      %c0_11 = arith.constant 0 : index
      %c0_12 = arith.constant 0 : index
      %13 = vector.load %arg7[%c0_11, %c0_12] : memref<16x32xf32, #tpu.memory_space<vmem>>, vector<16x32xf32>
      tpu.vector_store %arg7[%c0_11, %c0_12], %12 {strides = array<i32>} : memref<16x32xf32, #tpu.memory_space<vmem>>, vector<16x32xf32>,
    } else {
    }
    %c0 = arith.constant 0 : index
    %c0_1 = arith.constant 0 : index
    %3 = vector.load %arg7[%c0, %c0_1] : memref<16x32xf32, #tpu.memory_space<vmem>>, vector<16x32xf32>
    %c0_2 = arith.constant 0 : index
    %c0_3 = arith.constant 0 : index
    %4 = vector.load %arg3[%c0_2, %c0_3] : memref<16x16xbf16, #tpu.memory_space<vmem>>, vector<16x16xbf16>
    %c0_4 = arith.constant 0 : index
    %c0_5 = arith.constant 0 : index
    %5 = vector.load %arg4[%c0_4, %c0_5] : memref<16x32xbf16, #tpu.memory_space<vmem>>, vector<16x32xbf16>
    %cst = arith.constant dense<0.000000e+00> : vector<16x32xf32>
    %6 = tpu.matmul %4, %5, %cst {dimension_numbers = #tpu.dot_dimension_numbers<[1], [0], [0], [1], [0, 0, 1, 1], [], []>} : vector<16x16xbf16>, vector<16x32xbf16>, vector<16x32xf32> -> vector<16x32xf32>
    %7 = arith.addf %3, %6 : vector<16x32xf32>
    %c0_6 = arith.constant 0 : index
    %c0_7 = arith.constant 0 : index
    %8 = vector.load %arg7[%c0_6, %c0_7] : memref<16x32xf32, #tpu.memory_space<vmem>>, vector<16x32xf32>
    tpu.vector_store %arg7[%c0_6, %c0_7], %7 {strides = array<i32>} : memref<16x32xf32, #tpu.memory_space<vmem>>, vector<16x32xf32>,
    %c0_i32_8 = arith.constant 0 : i32
    %9 = arith.cmpi eq, %arg2, %c0_i32_8 : i32
    %10 = arith.extui %9 : i1 to i32
    %c0_i32_9 = arith.constant 0 : i32
    %11 = arith.cmpi ne, %10, %c0_i32_9 : i32
    scf.if %11 {
      %c0_10 = arith.constant 0 : index
      %c0_11 = arith.constant 0 : index
      %12 = vector.load %arg7[%c0_10, %c0_11] : memref<16x32xf32, #tpu.memory_space<vmem>>, vector<16x32xf32>
      %c0_12 = arith.constant 0 : index
      %c0_13 = arith.constant 0 : index
      %13 = vector.load %arg5[%c0_12, %c0_13] : memref<1x32xf32, #tpu.memory_space<vmem>>, vector<1x32xf32>
      %14 = vector.broadcast %13 : vector<1x32xf32> to vector<16x32xf32>
      %15 = arith.addf %12, %14 : vector<16x32xf32>
      %16 = arith.truncf %15 : vector<16x32xf32> to vector<16x32xbf16>
      %c0_14 = arith.constant 0 : index
      %c0_15 = arith.constant 0 : index
      %17 = vector.load %arg6[%c0_14, %c0_15] : memref<16x32xbf16, #tpu.memory_space<vmem>>, vector<16x32xbf16>
      tpu.vector_store %arg6[%c0_14, %c0_15], %16 {strides = array<i32>} : memref<16x32xbf16, #tpu.memory_space<vmem>>, vector<16x32xbf16>,
    } else {
    }
    return
  }
  func.func @transform_0(%arg0: i32, %arg1: i32, %arg2: i32) -> (i32, i32) {
    %c0_i32 = arith.constant 0 : i32
    return %arg0, %arg2 : i32, i32
  }
  func.func @transform_1(%arg0: i32, %arg1: i32, %arg2: i32) -> (i32, i32) {
    %c0_i32 = arith.constant 0 : i32
    return %arg2, %arg1 : i32, i32
  }
  func.func @transform_2(%arg0: i32, %arg1: i32, %arg2: i32) -> (i32, i32) {
    %c0_i32 = arith.constant 0 : i32
    %c0_i32_0 = arith.constant 0 : i32
    return %c0_i32, %arg1 : i32, i32
  }
  func.func @transform_3(%arg0: i32, %arg1: i32, %arg2: i32) -> (i32, i32) {
    %c0_i32 = arith.constant 0 : i32
    return %arg0, %arg1 : i32, i32
  }
}

module attributes {stable_mosaic.version = 11 : i64} {
  func.func @_linear_kernel(%arg0: i32, %arg1: i32, %arg2: i32, %arg3: memref<16x32xbf16, #tpu.memory_space<vmem>>, %arg4: memref<32x96xbf16, #tpu.memory_space<vmem>>, %arg5: memref<1x96xf32, #tpu.memory_space<vmem>>, %arg6: memref<16x96xbf16, #tpu.memory_space<vmem>>, %arg7: memref<16x96xf32, #tpu.memory_space<vmem>>) attributes {dimension_semantics = [#tpu.dimension_semantics<parallel>, #tpu.dimension_semantics<parallel>, #tpu.dimension_semantics<arbitrary>], iteration_bounds = array<i64: 1, 1, 1>, scalar_prefetch = 0 : i64, scratch_operands = 1 : i64, tpu.core_type = #tpu.core_type<tc>, window_params = [{transform_indices = @transform_0, window_bounds = array<i64: 16, 32>}, {transform_indices = @transform_1, window_bounds = array<i64: 32, 96>}, {transform_indices = @transform_2, window_bounds = array<i64: 1, 96>}, {transform_indices = @transform_3, window_bounds = array<i64: 16, 96>}]} {
    %c0_i32 = arith.constant 0 : i32
    %0 = arith.cmpi eq, %arg2, %c0_i32 : i32
    %1 = arith.extui %0 : i1 to i32
    %c0_i32_0 = arith.constant 0 : i32
    %2 = arith.cmpi ne, %1, %c0_i32_0 : i32
    scf.if %2 {
      %cst_10 = arith.constant 0.000000e+00 : f32
      %12 = vector.broadcast %cst_10 : f32 to vector<16x96xf32>
      %c0_11 = arith.constant 0 : index
      %c0_12 = arith.constant 0 : index
      %13 = vector.load %arg7[%c0_11, %c0_12] : memref<16x96xf32, #tpu.memory_space<vmem>>, vector<16x96xf32>
      tpu.vector_store %arg7[%c0_11, %c0_12], %12 {strides = array<i32>} : memref<16x96xf32, #tpu.memory_space<vmem>>, vector<16x96xf32>,
    } else {
    }
    %c0 = arith.constant 0 : index
    %c0_1 = arith.constant 0 : index
    %3 = vector.load %arg7[%c0, %c0_1] : memref<16x96xf32, #tpu.memory_space<vmem>>, vector<16x96xf32>
    %c0_2 = arith.constant 0 : index
    %c0_3 = arith.constant 0 : index
    %4 = vector.load %arg3[%c0_2, %c0_3] : memref<16x32xbf16, #tpu.memory_space<vmem>>, vector<16x32xbf16>
    %c0_4 = arith.constant 0 : index
    %c0_5 = arith.constant 0 : index
    %5 = vector.load %arg4[%c0_4, %c0_5] : memref<32x96xbf16, #tpu.memory_space<vmem>>, vector<32x96xbf16>
    %cst = arith.constant dense<0.000000e+00> : vector<16x96xf32>
    %6 = tpu.matmul %4, %5, %cst {dimension_numbers = #tpu.dot_dimension_numbers<[1], [0], [0], [1], [0, 0, 1, 1], [], []>} : vector<16x32xbf16>, vector<32x96xbf16>, vector<16x96xf32> -> vector<16x96xf32>
    %7 = arith.addf %3, %6 : vector<16x96xf32>
    %c0_6 = arith.constant 0 : index
    %c0_7 = arith.constant 0 : index
    %8 = vector.load %arg7[%c0_6, %c0_7] : memref<16x96xf32, #tpu.memory_space<vmem>>, vector<16x96xf32>
    tpu.vector_store %arg7[%c0_6, %c0_7], %7 {strides = array<i32>} : memref<16x96xf32, #tpu.memory_space<vmem>>, vector<16x96xf32>,
    %c0_i32_8 = arith.constant 0 : i32
    %9 = arith.cmpi eq, %arg2, %c0_i32_8 : i32
    %10 = arith.extui %9 : i1 to i32
    %c0_i32_9 = arith.constant 0 : i32
    %11 = arith.cmpi ne, %10, %c0_i32_9 : i32
    scf.if %11 {
      %c0_10 = arith.constant 0 : index
      %c0_11 = arith.constant 0 : index
      %12 = vector.load %arg7[%c0_10, %c0_11] : memref<16x96xf32, #tpu.memory_space<vmem>>, vector<16x96xf32>
      %c0_12 = arith.constant 0 : index
      %c0_13 = arith.constant 0 : index
      %13 = vector.load %arg5[%c0_12, %c0_13] : memref<1x96xf32, #tpu.memory_space<vmem>>, vector<1x96xf32>
      %14 = vector.broadcast %13 : vector<1x96xf32> to vector<16x96xf32>
      %15 = arith.addf %12, %14 : vector<16x96xf32>
      %16 = arith.truncf %15 : vector<16x96xf32> to vector<16x96xbf16>
      %c0_14 = arith.constant 0 : index
      %c0_15 = arith.constant 0 : index
      %17 = vector.load %arg6[%c0_14, %c0_15] : memref<16x96xbf16, #tpu.memory_space<vmem>>, vector<16x96xbf16>
      tpu.vector_store %arg6[%c0_14, %c0_15], %16 {strides = array<i32>} : memref<16x96xbf16, #tpu.memory_space<vmem>>, vector<16x96xbf16>,
    } else {
    }
    return
  }
  func.func @transform_0(%arg0: i32, %arg1: i32, %arg2: i32) -> (i32, i32) {
    %c0_i32 = arith.constant 0 : i32
    return %arg0, %arg2 : i32, i32
  }
  func.func @transform_1(%arg0: i32, %arg1: i32, %arg2: i32) -> (i32, i32) {
    %c0_i32 = arith.constant 0 : i32
    return %arg2, %arg1 : i32, i32
  }
  func.func @transform_2(%arg0: i32, %arg1: i32, %arg2: i32) -> (i32, i32) {
    %c0_i32 = arith.constant 0 : i32
    %c0_i32_0 = arith.constant 0 : i32
    return %c0_i32, %arg1 : i32, i32
  }
  func.func @transform_3(%arg0: i32, %arg1: i32, %arg2: i32) -> (i32, i32) {
    %c0_i32 = arith.constant 0 : i32
    return %arg0, %arg1 : i32, i32
  }
}

module attributes {stable_mosaic.version = 11 : i64} {
  func.func @_flash_attn_kernel(%arg0: i32, %arg1: i32, %arg2: i32, %arg3: memref<1x8x4xbf16, #tpu.memory_space<vmem>>, %arg4: memref<1x8x4xbf16, #tpu.memory_space<vmem>>, %arg5: memref<1x8x4xbf16, #tpu.memory_space<vmem>>, %arg6: memref<1x8x4xbf16, #tpu.memory_space<vmem>>, %arg7: memref<8x1xf32, #tpu.memory_space<vmem>>, %arg8: memref<8x1xf32, #tpu.memory_space<vmem>>, %arg9: memref<8x4xf32, #tpu.memory_space<vmem>>) attributes {dimension_semantics = [#tpu.dimension_semantics<parallel>, #tpu.dimension_semantics<parallel>, #tpu.dimension_semantics<arbitrary>], iteration_bounds = array<i64: 16, 1, 1>, scalar_prefetch = 0 : i64, scratch_operands = 3 : i64, tpu.core_type = #tpu.core_type<tc>, window_params = [{transform_indices = @transform_0, window_bounds = array<i64: 1, 8, 4>}, {transform_indices = @transform_1, window_bounds = array<i64: 1, 8, 4>}, {transform_indices = @transform_2, window_bounds = array<i64: 1, 8, 4>}, {transform_indices = @transform_3, window_bounds = array<i64: 1, 8, 4>}]} {
    %c0_i32 = arith.constant 0 : i32
    %0 = arith.cmpi eq, %arg2, %c0_i32 : i32
    %1 = arith.extui %0 : i1 to i32
    %c0_i32_0 = arith.constant 0 : i32
    %2 = arith.cmpi ne, %1, %c0_i32_0 : i32
    scf.if %2 {
      %cst_27 = arith.constant 0xFF800000 : f32
      %40 = vector.broadcast %cst_27 : f32 to vector<8x1xf32>
      %c0_28 = arith.constant 0 : index
      %c0_29 = arith.constant 0 : index
      %41 = vector.load %arg7[%c0_28, %c0_29] : memref<8x1xf32, #tpu.memory_space<vmem>>, vector<8x1xf32>
      tpu.vector_store %arg7[%c0_28, %c0_29], %40 {strides = array<i32>} : memref<8x1xf32, #tpu.memory_space<vmem>>, vector<8x1xf32>,
      %cst_30 = arith.constant 0.000000e+00 : f32
      %42 = vector.broadcast %cst_30 : f32 to vector<8x1xf32>
      %c0_31 = arith.constant 0 : index
      %c0_32 = arith.constant 0 : index
      %43 = vector.load %arg8[%c0_31, %c0_32] : memref<8x1xf32, #tpu.memory_space<vmem>>, vector<8x1xf32>
      tpu.vector_store %arg8[%c0_31, %c0_32], %42 {strides = array<i32>} : memref<8x1xf32, #tpu.memory_space<vmem>>, vector<8x1xf32>,
      %cst_33 = arith.constant 0.000000e+00 : f32
      %44 = vector.broadcast %cst_33 : f32 to vector<8x4xf32>
      %c0_34 = arith.constant 0 : index
      %c0_35 = arith.constant 0 : index
      %45 = vector.load %arg9[%c0_34, %c0_35] : memref<8x4xf32, #tpu.memory_space<vmem>>, vector<8x4xf32>
      tpu.vector_store %arg9[%c0_34, %c0_35], %44 {strides = array<i32>} : memref<8x4xf32, #tpu.memory_space<vmem>>, vector<8x4xf32>,
    } else {
    }
    %c0 = arith.constant 0 : index
    %c0_1 = arith.constant 0 : index
    %c0_2 = arith.constant 0 : index
    %3 = vector.load %arg3[%c0, %c0_1, %c0_2] : memref<1x8x4xbf16, #tpu.memory_space<vmem>>, vector<1x8x4xbf16>
    %4 = vector.shape_cast %3 : vector<1x8x4xbf16> to vector<8x4xbf16>
    %5 = arith.extf %4 : vector<8x4xbf16> to vector<8x4xf32>
    %cst = arith.constant 5.000000e-01 : f32
    %6 = vector.broadcast %cst : f32 to vector<8x4xf32>
    %7 = arith.mulf %5, %6 : vector<8x4xf32>
    %8 = arith.truncf %7 : vector<8x4xf32> to vector<8x4xbf16>
    %c0_3 = arith.constant 0 : index
    %c0_4 = arith.constant 0 : index
    %c0_5 = arith.constant 0 : index
    %9 = vector.load %arg4[%c0_3, %c0_4, %c0_5] : memref<1x8x4xbf16, #tpu.memory_space<vmem>>, vector<1x8x4xbf16>
    %10 = vector.shape_cast %9 : vector<1x8x4xbf16> to vector<8x4xbf16>
    %cst_6 = arith.constant dense<0.000000e+00> : vector<8x8xf32>
    %11 = tpu.matmul %8, %10, %cst_6 {dimension_numbers = #tpu.dot_dimension_numbers<[1], [1], [0], [0], [0, 0, 1, 0], [], []>} : vector<8x4xbf16>, vector<8x4xbf16>, vector<8x8xf32> -> vector<8x8xf32>
    %c0_7 = arith.constant 0 : index
    %c0_8 = arith.constant 0 : index
    %12 = vector.load %arg7[%c0_7, %c0_8] : memref<8x1xf32, #tpu.memory_space<vmem>>, vector<8x1xf32>
    %cst_9 = arith.constant dense<0xFF800000> : vector<8xf32>
    %13 = vector.multi_reduction <maximumf>, %11, %cst_9 [1] : vector<8x8xf32> to vector<8xf32>
    %14 = vector.shape_cast %13 : vector<8xf32> to vector<8x1xf32>
    %15 = arith.maximumf %12, %14 : vector<8x1xf32>
    %16 = arith.subf %12, %15 : vector<8x1xf32>
    %17 = math.exp %16 : vector<8x1xf32>
    %18 = vector.broadcast %15 : vector<8x1xf32> to vector<8x8xf32>
    %19 = arith.subf %11, %18 : vector<8x8xf32>
    %20 = math.exp %19 : vector<8x8xf32>
    %c0_10 = arith.constant 0 : index
    %c0_11 = arith.constant 0 : index
    %21 = vector.load %arg8[%c0_10, %c0_11] : memref<8x1xf32, #tpu.memory_space<vmem>>, vector<8x1xf32>
    %22 = arith.mulf %17, %21 : vector<8x1xf32>
    %cst_12 = arith.constant dense<0.000000e+00> : vector<8xf32>
    %23 = vector.multi_reduction <add>, %20, %cst_12 [1] : vector<8x8xf32> to vector<8xf32>
    %24 = vector.shape_cast %23 : vector<8xf32> to vector<8x1xf32>
    %25 = arith.addf %22, %24 : vector<8x1xf32>
    %c0_13 = arith.constant 0 : index
    %c0_14 = arith.constant 0 : index
    %26 = vector.load %arg8[%c0_13, %c0_14] : memref<8x1xf32, #tpu.memory_space<vmem>>, vector<8x1xf32>
    tpu.vector_store %arg8[%c0_13, %c0_14], %25 {strides = array<i32>} : memref<8x1xf32, #tpu.memory_space<vmem>>, vector<8x1xf32>,
    %c0_15 = arith.constant 0 : index
    %c0_16 = arith.constant 0 : index
    %27 = vector.load %arg9[%c0_15, %c0_16] : memref<8x4xf32, #tpu.memory_space<vmem>>, vector<8x4xf32>
    %28 = vector.broadcast %17 : vector<8x1xf32> to vector<8x4xf32>
    %29 = arith.mulf %28, %27 : vector<8x4xf32>
    %30 = arith.truncf %20 : vector<8x8xf32> to vector<8x8xbf16>
    %c0_17 = arith.constant 0 : index
    %c0_18 = arith.constant 0 : index
    %c0_19 = arith.constant 0 : index
    %31 = vector.load %arg5[%c0_17, %c0_18, %c0_19] : memref<1x8x4xbf16, #tpu.memory_space<vmem>>, vector<1x8x4xbf16>
    %32 = vector.shape_cast %31 : vector<1x8x4xbf16> to vector<8x4xbf16>
    %cst_20 = arith.constant dense<0.000000e+00> : vector<8x4xf32>
    %33 = tpu.matmul %30, %32, %cst_20 {dimension_numbers = #tpu.dot_dimension_numbers<[1], [0], [0], [1], [0, 0, 1, 1], [], []>} : vector<8x8xbf16>, vector<8x4xbf16>, vector<8x4xf32> -> vector<8x4xf32>
    %34 = arith.addf %29, %33 : vector<8x4xf32>
    %c0_21 = arith.constant 0 : index
    %c0_22 = arith.constant 0 : index
    %35 = vector.load %arg9[%c0_21, %c0_22] : memref<8x4xf32, #tpu.memory_space<vmem>>, vector<8x4xf32>
    tpu.vector_store %arg9[%c0_21, %c0_22], %34 {strides = array<i32>} : memref<8x4xf32, #tpu.memory_space<vmem>>, vector<8x4xf32>,
    %c0_23 = arith.constant 0 : index
    %c0_24 = arith.constant 0 : index
    %36 = vector.load %arg7[%c0_23, %c0_24] : memref<8x1xf32, #tpu.memory_space<vmem>>, vector<8x1xf32>
    tpu.vector_store %arg7[%c0_23, %c0_24], %15 {strides = array<i32>} : memref<8x1xf32, #tpu.memory_space<vmem>>, vector<8x1xf32>,
    %c0_i32_25 = arith.constant 0 : i32
    %37 = arith.cmpi eq, %arg2, %c0_i32_25 : i32
    %38 = arith.extui %37 : i1 to i32
    %c0_i32_26 = arith.constant 0 : i32
    %39 = arith.cmpi ne, %38, %c0_i32_26 : i32
    scf.if %39 {
      %c0_27 = arith.constant 0 : index
      %c0_28 = arith.constant 0 : index
      %40 = vector.load %arg9[%c0_27, %c0_28] : memref<8x4xf32, #tpu.memory_space<vmem>>, vector<8x4xf32>
      %c0_29 = arith.constant 0 : index
      %c0_30 = arith.constant 0 : index
      %41 = vector.load %arg8[%c0_29, %c0_30] : memref<8x1xf32, #tpu.memory_space<vmem>>, vector<8x1xf32>
      %42 = tpu.reciprocal %41 {approx = true} : vector<8x1xf32> -> vector<8x1xf32>
      %43 = vector.broadcast %42 : vector<8x1xf32> to vector<8x4xf32>
      %44 = arith.mulf %40, %43 : vector<8x4xf32>
      %45 = arith.truncf %44 : vector<8x4xf32> to vector<8x4xbf16>
      %c0_31 = arith.constant 0 : index
      %c0_32 = arith.constant 0 : index
      %c0_33 = arith.constant 0 : index
      %46 = vector.load %arg6[%c0_31, %c0_32, %c0_33] : memref<1x8x4xbf16, #tpu.memory_space<vmem>>, vector<1x8x4xbf16>
      %47 = vector.shape_cast %46 : vector<1x8x4xbf16> to vector<8x4xbf16>
      %48 = vector.shape_cast %45 : vector<8x4xbf16> to vector<1x8x4xbf16>
      tpu.vector_store %arg6[%c0_31, %c0_32, %c0_33], %48 {strides = array<i32>} : memref<1x8x4xbf16, #tpu.memory_space<vmem>>, vector<1x8x4xbf16>,
    } else {
    }
    return
  }
  func.func @transform_0(%arg0: i32, %arg1: i32, %arg2: i32) -> (i32, i32, i32) {
    %c0_i32 = arith.constant 0 : i32
    %c0_i32_0 = arith.constant 0 : i32
    return %arg0, %arg1, %c0_i32 : i32, i32, i32
  }
  func.func @transform_1(%arg0: i32, %arg1: i32, %arg2: i32) -> (i32, i32, i32) {
    %c0_i32 = arith.constant 0 : i32
    %c0_i32_0 = arith.constant 0 : i32
    return %arg0, %arg2, %c0_i32 : i32, i32, i32
  }
  func.func @transform_2(%arg0: i32, %arg1: i32, %arg2: i32) -> (i32, i32, i32) {
    %c0_i32 = arith.constant 0 : i32
    %c0_i32_0 = arith.constant 0 : i32
    return %arg0, %arg2, %c0_i32 : i32, i32, i32
  }
  func.func @transform_3(%arg0: i32, %arg1: i32, %arg2: i32) -> (i32, i32, i32) {
    %c0_i32 = arith.constant 0 : i32
    %c0_i32_0 = arith.constant 0 : i32
    return %arg0, %arg1, %c0_i32 : i32, i32, i32
  }
}

module attributes {stable_mosaic.version = 11 : i64} {
  func.func @_linear_kernel(%arg0: i32, %arg1: i32, %arg2: i32, %arg3: memref<16x32xbf16, #tpu.memory_space<vmem>>, %arg4: memref<32x128xbf16, #tpu.memory_space<vmem>>, %arg5: memref<1x128xf32, #tpu.memory_space<vmem>>, %arg6: memref<16x128xbf16, #tpu.memory_space<vmem>>, %arg7: memref<16x128xf32, #tpu.memory_space<vmem>>) attributes {dimension_semantics = [#tpu.dimension_semantics<parallel>, #tpu.dimension_semantics<parallel>, #tpu.dimension_semantics<arbitrary>], iteration_bounds = array<i64: 1, 1, 1>, scalar_prefetch = 0 : i64, scratch_operands = 1 : i64, tpu.core_type = #tpu.core_type<tc>, window_params = [{transform_indices = @transform_0, window_bounds = array<i64: 16, 32>}, {transform_indices = @transform_1, window_bounds = array<i64: 32, 128>}, {transform_indices = @transform_2, window_bounds = array<i64: 1, 128>}, {transform_indices = @transform_3, window_bounds = array<i64: 16, 128>}]} {
    %c0_i32 = arith.constant 0 : i32
    %0 = arith.cmpi eq, %arg2, %c0_i32 : i32
    %1 = arith.extui %0 : i1 to i32
    %c0_i32_0 = arith.constant 0 : i32
    %2 = arith.cmpi ne, %1, %c0_i32_0 : i32
    scf.if %2 {
      %cst_10 = arith.constant 0.000000e+00 : f32
      %12 = vector.broadcast %cst_10 : f32 to vector<16x128xf32>
      %c0_11 = arith.constant 0 : index
      %c0_12 = arith.constant 0 : index
      %13 = vector.load %arg7[%c0_11, %c0_12] : memref<16x128xf32, #tpu.memory_space<vmem>>, vector<16x128xf32>
      tpu.vector_store %arg7[%c0_11, %c0_12], %12 {strides = array<i32>} : memref<16x128xf32, #tpu.memory_space<vmem>>, vector<16x128xf32>,
    } else {
    }
    %c0 = arith.constant 0 : index
    %c0_1 = arith.constant 0 : index
    %3 = vector.load %arg7[%c0, %c0_1] : memref<16x128xf32, #tpu.memory_space<vmem>>, vector<16x128xf32>
    %c0_2 = arith.constant 0 : index
    %c0_3 = arith.constant 0 : index
    %4 = vector.load %arg3[%c0_2, %c0_3] : memref<16x32xbf16, #tpu.memory_space<vmem>>, vector<16x32xbf16>
    %c0_4 = arith.constant 0 : index
    %c0_5 = arith.constant 0 : index
    %5 = vector.load %arg4[%c0_4, %c0_5] : memref<32x128xbf16, #tpu.memory_space<vmem>>, vector<32x128xbf16>
    %cst = arith.constant dense<0.000000e+00> : vector<16x128xf32>
    %6 = tpu.matmul %4, %5, %cst {dimension_numbers = #tpu.dot_dimension_numbers<[1], [0], [0], [1], [0, 0, 1, 1], [], []>} : vector<16x32xbf16>, vector<32x128xbf16>, vector<16x128xf32> -> vector<16x128xf32>
    %7 = arith.addf %3, %6 : vector<16x128xf32>
    %c0_6 = arith.constant 0 : index
    %c0_7 = arith.constant 0 : index
    %8 = vector.load %arg7[%c0_6, %c0_7] : memref<16x128xf32, #tpu.memory_space<vmem>>, vector<16x128xf32>
    tpu.vector_store %arg7[%c0_6, %c0_7], %7 {strides = array<i32>} : memref<16x128xf32, #tpu.memory_space<vmem>>, vector<16x128xf32>,
    %c0_i32_8 = arith.constant 0 : i32
    %9 = arith.cmpi eq, %arg2, %c0_i32_8 : i32
    %10 = arith.extui %9 : i1 to i32
    %c0_i32_9 = arith.constant 0 : i32
    %11 = arith.cmpi ne, %10, %c0_i32_9 : i32
    scf.if %11 {
      %c0_10 = arith.constant 0 : index
      %c0_11 = arith.constant 0 : index
      %12 = vector.load %arg7[%c0_10, %c0_11] : memref<16x128xf32, #tpu.memory_space<vmem>>, vector<16x128xf32>
      %c0_12 = arith.constant 0 : index
      %c0_13 = arith.constant 0 : index
      %13 = vector.load %arg5[%c0_12, %c0_13] : memref<1x128xf32, #tpu.memory_space<vmem>>, vector<1x128xf32>
      %14 = vector.broadcast %13 : vector<1x128xf32> to vector<16x128xf32>
      %15 = arith.addf %12, %14 : vector<16x128xf32>
      %cst_14 = arith.constant 5.000000e-01 : f32
      %16 = vector.broadcast %cst_14 : f32 to vector<16x128xf32>
      %17 = arith.mulf %16, %15 : vector<16x128xf32>
      %cst_15 = arith.constant 4.471500e-02 : f32
      %18 = vector.broadcast %cst_15 : f32 to vector<16x128xf32>
      %19 = arith.mulf %18, %15 : vector<16x128xf32>
      %20 = arith.mulf %19, %15 : vector<16x128xf32>
      %21 = arith.mulf %20, %15 : vector<16x128xf32>
      %22 = arith.addf %15, %21 : vector<16x128xf32>
      %cst_16 = arith.constant 0.797884583 : f32
      %23 = vector.broadcast %cst_16 : f32 to vector<16x128xf32>
      %24 = arith.mulf %23, %22 : vector<16x128xf32>
      %25 = math.tanh %24 : vector<16x128xf32>
      %cst_17 = arith.constant 1.000000e+00 : f32
      %26 = vector.broadcast %cst_17 : f32 to vector<16x128xf32>
      %27 = arith.addf %26, %25 : vector<16x128xf32>
      %28 = arith.mulf %17, %27 : vector<16x128xf32>
      %29 = arith.truncf %28 : vector<16x128xf32> to vector<16x128xbf16>
      %c0_18 = arith.constant 0 : index
      %c0_19 = arith.constant 0 : index
      %30 = vector.load %arg6[%c0_18, %c0_19] : memref<16x128xbf16, #tpu.memory_space<vmem>>, vector<16x128xbf16>
      tpu.vector_store %arg6[%c0_18, %c0_19], %29 {strides = array<i32>} : memref<16x128xbf16, #tpu.memory_space<vmem>>, vector<16x128xbf16>,
    } else {
    }
    return
  }
  func.func @transform_0(%arg0: i32, %arg1: i32, %arg2: i32) -> (i32, i32) {
    %c0_i32 = arith.constant 0 : i32
    return %arg0, %arg2 : i32, i32
  }
  func.func @transform_1(%arg0: i32, %arg1: i32, %arg2: i32) -> (i32, i32) {
    %c0_i32 = arith.constant 0 : i32
    return %arg2, %arg1 : i32, i32
  }
  func.func @transform_2(%arg0: i32, %arg1: i32, %arg2: i32) -> (i32, i32) {
    %c0_i32 = arith.constant 0 : i32
    %c0_i32_0 = arith.constant 0 : i32
    return %c0_i32, %arg1 : i32, i32
  }
  func.func @transform_3(%arg0: i32, %arg1: i32, %arg2: i32) -> (i32, i32) {
    %c0_i32 = arith.constant 0 : i32
    return %arg0, %arg1 : i32, i32
  }
}

module attributes {stable_mosaic.version = 11 : i64} {
  func.func @_linear_res_ln_kernel(%arg0: i32, %arg1: i32, %arg2: memref<16x128xbf16, #tpu.memory_space<vmem>>, %arg3: memref<128x32xbf16, #tpu.memory_space<vmem>>, %arg4: memref<1x32xf32, #tpu.memory_space<vmem>>, %arg5: memref<16x32xbf16, #tpu.memory_space<vmem>>, %arg6: memref<1x32xf32, #tpu.memory_space<vmem>>, %arg7: memref<1x32xf32, #tpu.memory_space<vmem>>, %arg8: memref<16x32xbf16, #tpu.memory_space<vmem>>, %arg9: memref<16x32xf32, #tpu.memory_space<vmem>>) attributes {dimension_semantics = [#tpu.dimension_semantics<parallel>, #tpu.dimension_semantics<arbitrary>], iteration_bounds = array<i64: 1, 1>, scalar_prefetch = 0 : i64, scratch_operands = 1 : i64, tpu.core_type = #tpu.core_type<tc>, window_params = [{transform_indices = @transform_0, window_bounds = array<i64: 16, 128>}, {transform_indices = @transform_1, window_bounds = array<i64: 128, 32>}, {pipeline_mode = #tpu.pipeline_mode<synchronous>, transform_indices = @transform_2, window_bounds = array<i64: 1, 32>}, {transform_indices = @transform_3, window_bounds = array<i64: 16, 32>}, {pipeline_mode = #tpu.pipeline_mode<synchronous>, transform_indices = @transform_4, window_bounds = array<i64: 1, 32>}, {pipeline_mode = #tpu.pipeline_mode<synchronous>, transform_indices = @transform_5, window_bounds = array<i64: 1, 32>}, {transform_indices = @transform_6, window_bounds = array<i64: 16, 32>}]} {
    %c0_i32 = arith.constant 0 : i32
    %0 = arith.cmpi eq, %arg1, %c0_i32 : i32
    %1 = arith.extui %0 : i1 to i32
    %c0_i32_0 = arith.constant 0 : i32
    %2 = arith.cmpi ne, %1, %c0_i32_0 : i32
    scf.if %2 {
      %cst_10 = arith.constant 0.000000e+00 : f32
      %12 = vector.broadcast %cst_10 : f32 to vector<16x32xf32>
      %c0_11 = arith.constant 0 : index
      %c0_12 = arith.constant 0 : index
      %13 = vector.load %arg9[%c0_11, %c0_12] : memref<16x32xf32, #tpu.memory_space<vmem>>, vector<16x32xf32>
      tpu.vector_store %arg9[%c0_11, %c0_12], %12 {strides = array<i32>} : memref<16x32xf32, #tpu.memory_space<vmem>>, vector<16x32xf32>,
    } else {
    }
    %c0 = arith.constant 0 : index
    %c0_1 = arith.constant 0 : index
    %3 = vector.load %arg9[%c0, %c0_1] : memref<16x32xf32, #tpu.memory_space<vmem>>, vector<16x32xf32>
    %c0_2 = arith.constant 0 : index
    %c0_3 = arith.constant 0 : index
    %4 = vector.load %arg2[%c0_2, %c0_3] : memref<16x128xbf16, #tpu.memory_space<vmem>>, vector<16x128xbf16>
    %c0_4 = arith.constant 0 : index
    %c0_5 = arith.constant 0 : index
    %5 = vector.load %arg3[%c0_4, %c0_5] : memref<128x32xbf16, #tpu.memory_space<vmem>>, vector<128x32xbf16>
    %cst = arith.constant dense<0.000000e+00> : vector<16x32xf32>
    %6 = tpu.matmul %4, %5, %cst {dimension_numbers = #tpu.dot_dimension_numbers<[1], [0], [0], [1], [0, 0, 1, 1], [], []>} : vector<16x128xbf16>, vector<128x32xbf16>, vector<16x32xf32> -> vector<16x32xf32>
    %7 = arith.addf %3, %6 : vector<16x32xf32>
    %c0_6 = arith.constant 0 : index
    %c0_7 = arith.constant 0 : index
    %8 = vector.load %arg9[%c0_6, %c0_7] : memref<16x32xf32, #tpu.memory_space<vmem>>, vector<16x32xf32>
    tpu.vector_store %arg9[%c0_6, %c0_7], %7 {strides = array<i32>} : memref<16x32xf32, #tpu.memory_space<vmem>>, vector<16x32xf32>,
    %c0_i32_8 = arith.constant 0 : i32
    %9 = arith.cmpi eq, %arg1, %c0_i32_8 : i32
    %10 = arith.extui %9 : i1 to i32
    %c0_i32_9 = arith.constant 0 : i32
    %11 = arith.cmpi ne, %10, %c0_i32_9 : i32
    scf.if %11 {
      %c0_10 = arith.constant 0 : index
      %c0_11 = arith.constant 0 : index
      %12 = vector.load %arg9[%c0_10, %c0_11] : memref<16x32xf32, #tpu.memory_space<vmem>>, vector<16x32xf32>
      %c0_12 = arith.constant 0 : index
      %c0_13 = arith.constant 0 : index
      %13 = vector.load %arg4[%c0_12, %c0_13] : memref<1x32xf32, #tpu.memory_space<vmem>>, vector<1x32xf32>
      %14 = vector.broadcast %13 : vector<1x32xf32> to vector<16x32xf32>
      %15 = arith.addf %12, %14 : vector<16x32xf32>
      %c0_14 = arith.constant 0 : index
      %c0_15 = arith.constant 0 : index
      %16 = vector.load %arg5[%c0_14, %c0_15] : memref<16x32xbf16, #tpu.memory_space<vmem>>, vector<16x32xbf16>
      %17 = arith.extf %16 : vector<16x32xbf16> to vector<16x32xf32>
      %18 = arith.addf %15, %17 : vector<16x32xf32>
      %cst_16 = arith.constant dense<0.000000e+00> : vector<16xf32>
      %19 = vector.multi_reduction <add>, %18, %cst_16 [1] : vector<16x32xf32> to vector<16xf32>
      %20 = vector.shape_cast %19 : vector<16xf32> to vector<16x1xf32>
      %cst_17 = arith.constant 3.200000e+01 : f32
      %21 = vector.broadcast %cst_17 : f32 to vector<16x1xf32>
      %22 = arith.divf %20, %21 : vector<16x1xf32>
      %23 = vector.broadcast %22 : vector<16x1xf32> to vector<16x32xf32>
      %24 = arith.subf %18, %23 : vector<16x32xf32>
      %25 = arith.mulf %24, %24 : vector<16x32xf32>
      %cst_18 = arith.constant dense<0.000000e+00> : vector<16xf32>
      %26 = vector.multi_reduction <add>, %25, %cst_18 [1] : vector<16x32xf32> to vector<16xf32>
      %27 = vector.shape_cast %26 : vector<16xf32> to vector<16x1xf32>
      %cst_19 = arith.constant 3.200000e+01 : f32
      %28 = vector.broadcast %cst_19 : f32 to vector<16x1xf32>
      %29 = arith.divf %27, %28 : vector<16x1xf32>
      %cst_20 = arith.constant 9.99999974E-6 : f32
      %30 = vector.broadcast %cst_20 : f32 to vector<16x1xf32>
      %31 = arith.addf %29, %30 : vector<16x1xf32>
      %32 = math.rsqrt %31 : vector<16x1xf32>
      %33 = vector.broadcast %32 : vector<16x1xf32> to vector<16x32xf32>
      %34 = arith.mulf %24, %33 : vector<16x32xf32>
      %c0_21 = arith.constant 0 : index
      %c0_22 = arith.constant 0 : index
      %35 = vector.load %arg6[%c0_21, %c0_22] : memref<1x32xf32, #tpu.memory_space<vmem>>, vector<1x32xf32>
      %36 = vector.broadcast %35 : vector<1x32xf32> to vector<16x32xf32>
      %37 = arith.mulf %34, %36 : vector<16x32xf32>
      %c0_23 = arith.constant 0 : index
      %c0_24 = arith.constant 0 : index
      %38 = vector.load %arg7[%c0_23, %c0_24] : memref<1x32xf32, #tpu.memory_space<vmem>>, vector<1x32xf32>
      %39 = vector.broadcast %38 : vector<1x32xf32> to vector<16x32xf32>
      %40 = arith.addf %37, %39 : vector<16x32xf32>
      %41 = arith.truncf %40 : vector<16x32xf32> to vector<16x32xbf16>
      %c0_25 = arith.constant 0 : index
      %c0_26 = arith.constant 0 : index
      %42 = vector.load %arg8[%c0_25, %c0_26] : memref<16x32xbf16, #tpu.memory_space<vmem>>, vector<16x32xbf16>
      tpu.vector_store %arg8[%c0_25, %c0_26], %41 {strides = array<i32>} : memref<16x32xbf16, #tpu.memory_space<vmem>>, vector<16x32xbf16>,
    } else {
    }
    return
  }
  func.func @transform_0(%arg0: i32, %arg1: i32) -> (i32, i32) {
    %c0_i32 = arith.constant 0 : i32
    return %arg0, %arg1 : i32, i32
  }
  func.func @transform_1(%arg0: i32, %arg1: i32) -> (i32, i32) {
    %c0_i32 = arith.constant 0 : i32
    %c0_i32_0 = arith.constant 0 : i32
    return %arg1, %c0_i32 : i32, i32
  }
  func.func @transform_2(%arg0: i32, %arg1: i32) -> (i32, i32) {
    %c0_i32 = arith.constant 0 : i32
    %c0_i32_0 = arith.constant 0 : i32
    %c0_i32_1 = arith.constant 0 : i32
    return %c0_i32, %c0_i32_0 : i32, i32
  }
  func.func @transform_3(%arg0: i32, %arg1: i32) -> (i32, i32) {
    %c0_i32 = arith.constant 0 : i32
    %c0_i32_0 = arith.constant 0 : i32
    return %arg0, %c0_i32 : i32, i32
  }
  func.func @transform_4(%arg0: i32, %arg1: i32) -> (i32, i32) {
    %c0_i32 = arith.constant 0 : i32
    %c0_i32_0 = arith.constant 0 : i32
    %c0_i32_1 = arith.constant 0 : i32
    return %c0_i32, %c0_i32_0 : i32, i32
  }
  func.func @transform_5(%arg0: i32, %arg1: i32) -> (i32, i32) {
    %c0_i32 = arith.constant 0 : i32
    %c0_i32_0 = arith.constant 0 : i32
    %c0_i32_1 = arith.constant 0 : i32
    return %c0_i32, %c0_i32_0 : i32, i32
  }
  func.func @transform_6(%arg0: i32, %arg1: i32) -> (i32, i32) {
    %c0_i32 = arith.constant 0 : i32
    %c0_i32_0 = arith.constant 0 : i32
    return %arg0, %c0_i32 : i32, i32
  }
}

module attributes {stable_mosaic.version = 11 : i64} {
  func.func @_linear_res_ln_kernel(%arg0: i32, %arg1: i32, %arg2: memref<16x32xbf16, #tpu.memory_space<vmem>>, %arg3: memref<32x32xbf16, #tpu.memory_space<vmem>>, %arg4: memref<1x32xf32, #tpu.memory_space<vmem>>, %arg5: memref<16x32xbf16, #tpu.memory_space<vmem>>, %arg6: memref<1x32xf32, #tpu.memory_space<vmem>>, %arg7: memref<1x32xf32, #tpu.memory_space<vmem>>, %arg8: memref<16x32xbf16, #tpu.memory_space<vmem>>, %arg9: memref<16x32xf32, #tpu.memory_space<vmem>>) attributes {dimension_semantics = [#tpu.dimension_semantics<parallel>, #tpu.dimension_semantics<arbitrary>], iteration_bounds = array<i64: 1, 1>, scalar_prefetch = 0 : i64, scratch_operands = 1 : i64, tpu.core_type = #tpu.core_type<tc>, window_params = [{transform_indices = @transform_0, window_bounds = array<i64: 16, 32>}, {transform_indices = @transform_1, window_bounds = array<i64: 32, 32>}, {pipeline_mode = #tpu.pipeline_mode<synchronous>, transform_indices = @transform_2, window_bounds = array<i64: 1, 32>}, {transform_indices = @transform_3, window_bounds = array<i64: 16, 32>}, {pipeline_mode = #tpu.pipeline_mode<synchronous>, transform_indices = @transform_4, window_bounds = array<i64: 1, 32>}, {pipeline_mode = #tpu.pipeline_mode<synchronous>, transform_indices = @transform_5, window_bounds = array<i64: 1, 32>}, {transform_indices = @transform_6, window_bounds = array<i64: 16, 32>}]} {
    %c0_i32 = arith.constant 0 : i32
    %0 = arith.cmpi eq, %arg1, %c0_i32 : i32
    %1 = arith.extui %0 : i1 to i32
    %c0_i32_0 = arith.constant 0 : i32
    %2 = arith.cmpi ne, %1, %c0_i32_0 : i32
    scf.if %2 {
      %cst_10 = arith.constant 0.000000e+00 : f32
      %12 = vector.broadcast %cst_10 : f32 to vector<16x32xf32>
      %c0_11 = arith.constant 0 : index
      %c0_12 = arith.constant 0 : index
      %13 = vector.load %arg9[%c0_11, %c0_12] : memref<16x32xf32, #tpu.memory_space<vmem>>, vector<16x32xf32>
      tpu.vector_store %arg9[%c0_11, %c0_12], %12 {strides = array<i32>} : memref<16x32xf32, #tpu.memory_space<vmem>>, vector<16x32xf32>,
    } else {
    }
    %c0 = arith.constant 0 : index
    %c0_1 = arith.constant 0 : index
    %3 = vector.load %arg9[%c0, %c0_1] : memref<16x32xf32, #tpu.memory_space<vmem>>, vector<16x32xf32>
    %c0_2 = arith.constant 0 : index
    %c0_3 = arith.constant 0 : index
    %4 = vector.load %arg2[%c0_2, %c0_3] : memref<16x32xbf16, #tpu.memory_space<vmem>>, vector<16x32xbf16>
    %c0_4 = arith.constant 0 : index
    %c0_5 = arith.constant 0 : index
    %5 = vector.load %arg3[%c0_4, %c0_5] : memref<32x32xbf16, #tpu.memory_space<vmem>>, vector<32x32xbf16>
    %cst = arith.constant dense<0.000000e+00> : vector<16x32xf32>
    %6 = tpu.matmul %4, %5, %cst {dimension_numbers = #tpu.dot_dimension_numbers<[1], [0], [0], [1], [0, 0, 1, 1], [], []>} : vector<16x32xbf16>, vector<32x32xbf16>, vector<16x32xf32> -> vector<16x32xf32>
    %7 = arith.addf %3, %6 : vector<16x32xf32>
    %c0_6 = arith.constant 0 : index
    %c0_7 = arith.constant 0 : index
    %8 = vector.load %arg9[%c0_6, %c0_7] : memref<16x32xf32, #tpu.memory_space<vmem>>, vector<16x32xf32>
    tpu.vector_store %arg9[%c0_6, %c0_7], %7 {strides = array<i32>} : memref<16x32xf32, #tpu.memory_space<vmem>>, vector<16x32xf32>,
    %c0_i32_8 = arith.constant 0 : i32
    %9 = arith.cmpi eq, %arg1, %c0_i32_8 : i32
    %10 = arith.extui %9 : i1 to i32
    %c0_i32_9 = arith.constant 0 : i32
    %11 = arith.cmpi ne, %10, %c0_i32_9 : i32
    scf.if %11 {
      %c0_10 = arith.constant 0 : index
      %c0_11 = arith.constant 0 : index
      %12 = vector.load %arg9[%c0_10, %c0_11] : memref<16x32xf32, #tpu.memory_space<vmem>>, vector<16x32xf32>
      %c0_12 = arith.constant 0 : index
      %c0_13 = arith.constant 0 : index
      %13 = vector.load %arg4[%c0_12, %c0_13] : memref<1x32xf32, #tpu.memory_space<vmem>>, vector<1x32xf32>
      %14 = vector.broadcast %13 : vector<1x32xf32> to vector<16x32xf32>
      %15 = arith.addf %12, %14 : vector<16x32xf32>
      %c0_14 = arith.constant 0 : index
      %c0_15 = arith.constant 0 : index
      %16 = vector.load %arg5[%c0_14, %c0_15] : memref<16x32xbf16, #tpu.memory_space<vmem>>, vector<16x32xbf16>
      %17 = arith.extf %16 : vector<16x32xbf16> to vector<16x32xf32>
      %18 = arith.addf %15, %17 : vector<16x32xf32>
      %cst_16 = arith.constant dense<0.000000e+00> : vector<16xf32>
      %19 = vector.multi_reduction <add>, %18, %cst_16 [1] : vector<16x32xf32> to vector<16xf32>
      %20 = vector.shape_cast %19 : vector<16xf32> to vector<16x1xf32>
      %cst_17 = arith.constant 3.200000e+01 : f32
      %21 = vector.broadcast %cst_17 : f32 to vector<16x1xf32>
      %22 = arith.divf %20, %21 : vector<16x1xf32>
      %23 = vector.broadcast %22 : vector<16x1xf32> to vector<16x32xf32>
      %24 = arith.subf %18, %23 : vector<16x32xf32>
      %25 = arith.mulf %24, %24 : vector<16x32xf32>
      %cst_18 = arith.constant dense<0.000000e+00> : vector<16xf32>
      %26 = vector.multi_reduction <add>, %25, %cst_18 [1] : vector<16x32xf32> to vector<16xf32>
      %27 = vector.shape_cast %26 : vector<16xf32> to vector<16x1xf32>
      %cst_19 = arith.constant 3.200000e+01 : f32
      %28 = vector.broadcast %cst_19 : f32 to vector<16x1xf32>
      %29 = arith.divf %27, %28 : vector<16x1xf32>
      %cst_20 = arith.constant 9.99999974E-6 : f32
      %30 = vector.broadcast %cst_20 : f32 to vector<16x1xf32>
      %31 = arith.addf %29, %30 : vector<16x1xf32>
      %32 = math.rsqrt %31 : vector<16x1xf32>
      %33 = vector.broadcast %32 : vector<16x1xf32> to vector<16x32xf32>
      %34 = arith.mulf %24, %33 : vector<16x32xf32>
      %c0_21 = arith.constant 0 : index
      %c0_22 = arith.constant 0 : index
      %35 = vector.load %arg6[%c0_21, %c0_22] : memref<1x32xf32, #tpu.memory_space<vmem>>, vector<1x32xf32>
      %36 = vector.broadcast %35 : vector<1x32xf32> to vector<16x32xf32>
      %37 = arith.mulf %34, %36 : vector<16x32xf32>
      %c0_23 = arith.constant 0 : index
      %c0_24 = arith.constant 0 : index
      %38 = vector.load %arg7[%c0_23, %c0_24] : memref<1x32xf32, #tpu.memory_space<vmem>>, vector<1x32xf32>
      %39 = vector.broadcast %38 : vector<1x32xf32> to vector<16x32xf32>
      %40 = arith.addf %37, %39 : vector<16x32xf32>
      %41 = arith.truncf %40 : vector<16x32xf32> to vector<16x32xbf16>
      %c0_25 = arith.constant 0 : index
      %c0_26 = arith.constant 0 : index
      %42 = vector.load %arg8[%c0_25, %c0_26] : memref<16x32xbf16, #tpu.memory_space<vmem>>, vector<16x32xbf16>
      tpu.vector_store %arg8[%c0_25, %c0_26], %41 {strides = array<i32>} : memref<16x32xbf16, #tpu.memory_space<vmem>>, vector<16x32xbf16>,
    } else {
    }
    return
  }
  func.func @transform_0(%arg0: i32, %arg1: i32) -> (i32, i32) {
    %c0_i32 = arith.constant 0 : i32
    return %arg0, %arg1 : i32, i32
  }
  func.func @transform_1(%arg0: i32, %arg1: i32) -> (i32, i32) {
    %c0_i32 = arith.constant 0 : i32
    %c0_i32_0 = arith.constant 0 : i32
    return %arg1, %c0_i32 : i32, i32
  }
  func.func @transform_2(%arg0: i32, %arg1: i32) -> (i32, i32) {
    %c0_i32 = arith.constant 0 : i32
    %c0_i32_0 = arith.constant 0 : i32
    %c0_i32_1 = arith.constant 0 : i32
    return %c0_i32, %c0_i32_0 : i32, i32
  }
  func.func @transform_3(%arg0: i32, %arg1: i32) -> (i32, i32) {
    %c0_i32 = arith.constant 0 : i32
    %c0_i32_0 = arith.constant 0 : i32
    return %arg0, %c0_i32 : i32, i32
  }
  func.func @transform_4(%arg0: i32, %arg1: i32) -> (i32, i32) {
    %c0_i32 = arith.constant 0 : i32
    %c0_i32_0 = arith.constant 0 : i32
    %c0_i32_1 = arith.constant 0 : i32
    return %c0_i32, %c0_i32_0 : i32, i32
  }
  func.func @transform_5(%arg0: i32, %arg1: i32) -> (i32, i32) {
    %c0_i32 = arith.constant 0 : i32
    %c0_i32_0 = arith.constant 0 : i32
    %c0_i32_1 = arith.constant 0 : i32
    return %c0_i32, %c0_i32_0 : i32, i32
  }
  func.func @transform_6(%arg0: i32, %arg1: i32) -> (i32, i32) {
    %c0_i32 = arith.constant 0 : i32
    %c0_i32_0 = arith.constant 0 : i32
    return %arg0, %c0_i32 : i32, i32
  }
}

module attributes {stable_mosaic.version = 11 : i64} {
  func.func @_linear_kernel(%arg0: i32, %arg1: i32, %arg2: i32, %arg3: memref<16x32xbf16, #tpu.memory_space<vmem>>, %arg4: memref<32x24xbf16, #tpu.memory_space<vmem>>, %arg5: memref<1x24xf32, #tpu.memory_space<vmem>>, %arg6: memref<16x24xf32, #tpu.memory_space<vmem>>, %arg7: memref<16x24xf32, #tpu.memory_space<vmem>>) attributes {dimension_semantics = [#tpu.dimension_semantics<parallel>, #tpu.dimension_semantics<parallel>, #tpu.dimension_semantics<arbitrary>], iteration_bounds = array<i64: 1, 1, 1>, scalar_prefetch = 0 : i64, scratch_operands = 1 : i64, tpu.core_type = #tpu.core_type<tc>, window_params = [{transform_indices = @transform_0, window_bounds = array<i64: 16, 32>}, {transform_indices = @transform_1, window_bounds = array<i64: 32, 24>}, {transform_indices = @transform_2, window_bounds = array<i64: 1, 24>}, {transform_indices = @transform_3, window_bounds = array<i64: 16, 24>}]} {
    %c0_i32 = arith.constant 0 : i32
    %0 = arith.cmpi eq, %arg2, %c0_i32 : i32
    %1 = arith.extui %0 : i1 to i32
    %c0_i32_0 = arith.constant 0 : i32
    %2 = arith.cmpi ne, %1, %c0_i32_0 : i32
    scf.if %2 {
      %cst_10 = arith.constant 0.000000e+00 : f32
      %12 = vector.broadcast %cst_10 : f32 to vector<16x24xf32>
      %c0_11 = arith.constant 0 : index
      %c0_12 = arith.constant 0 : index
      %13 = vector.load %arg7[%c0_11, %c0_12] : memref<16x24xf32, #tpu.memory_space<vmem>>, vector<16x24xf32>
      tpu.vector_store %arg7[%c0_11, %c0_12], %12 {strides = array<i32>} : memref<16x24xf32, #tpu.memory_space<vmem>>, vector<16x24xf32>,
    } else {
    }
    %c0 = arith.constant 0 : index
    %c0_1 = arith.constant 0 : index
    %3 = vector.load %arg7[%c0, %c0_1] : memref<16x24xf32, #tpu.memory_space<vmem>>, vector<16x24xf32>
    %c0_2 = arith.constant 0 : index
    %c0_3 = arith.constant 0 : index
    %4 = vector.load %arg3[%c0_2, %c0_3] : memref<16x32xbf16, #tpu.memory_space<vmem>>, vector<16x32xbf16>
    %c0_4 = arith.constant 0 : index
    %c0_5 = arith.constant 0 : index
    %5 = vector.load %arg4[%c0_4, %c0_5] : memref<32x24xbf16, #tpu.memory_space<vmem>>, vector<32x24xbf16>
    %cst = arith.constant dense<0.000000e+00> : vector<16x24xf32>
    %6 = tpu.matmul %4, %5, %cst {dimension_numbers = #tpu.dot_dimension_numbers<[1], [0], [0], [1], [0, 0, 1, 1], [], []>} : vector<16x32xbf16>, vector<32x24xbf16>, vector<16x24xf32> -> vector<16x24xf32>
    %7 = arith.addf %3, %6 : vector<16x24xf32>
    %c0_6 = arith.constant 0 : index
    %c0_7 = arith.constant 0 : index
    %8 = vector.load %arg7[%c0_6, %c0_7] : memref<16x24xf32, #tpu.memory_space<vmem>>, vector<16x24xf32>
    tpu.vector_store %arg7[%c0_6, %c0_7], %7 {strides = array<i32>} : memref<16x24xf32, #tpu.memory_space<vmem>>, vector<16x24xf32>,
    %c0_i32_8 = arith.constant 0 : i32
    %9 = arith.cmpi eq, %arg2, %c0_i32_8 : i32
    %10 = arith.extui %9 : i1 to i32
    %c0_i32_9 = arith.constant 0 : i32
    %11 = arith.cmpi ne, %10, %c0_i32_9 : i32
    scf.if %11 {
      %c0_10 = arith.constant 0 : index
      %c0_11 = arith.constant 0 : index
      %12 = vector.load %arg7[%c0_10, %c0_11] : memref<16x24xf32, #tpu.memory_space<vmem>>, vector<16x24xf32>
      %c0_12 = arith.constant 0 : index
      %c0_13 = arith.constant 0 : index
      %13 = vector.load %arg5[%c0_12, %c0_13] : memref<1x24xf32, #tpu.memory_space<vmem>>, vector<1x24xf32>
      %14 = vector.broadcast %13 : vector<1x24xf32> to vector<16x24xf32>
      %15 = arith.addf %12, %14 : vector<16x24xf32>
      %c0_14 = arith.constant 0 : index
      %c0_15 = arith.constant 0 : index
      %16 = vector.load %arg6[%c0_14, %c0_15] : memref<16x24xf32, #tpu.memory_space<vmem>>, vector<16x24xf32>
      tpu.vector_store %arg6[%c0_14, %c0_15], %15 {strides = array<i32>} : memref<16x24xf32, #tpu.memory_space<vmem>>, vector<16x24xf32>,
    } else {
    }
    return
  }
  func.func @transform_0(%arg0: i32, %arg1: i32, %arg2: i32) -> (i32, i32) {
    %c0_i32 = arith.constant 0 : i32
    return %arg0, %arg2 : i32, i32
  }
  func.func @transform_1(%arg0: i32, %arg1: i32, %arg2: i32) -> (i32, i32) {
    %c0_i32 = arith.constant 0 : i32
    return %arg2, %arg1 : i32, i32
  }
  func.func @transform_2(%arg0: i32, %arg1: i32, %arg2: i32) -> (i32, i32) {
    %c0_i32 = arith.constant 0 : i32
    %c0_i32_0 = arith.constant 0 : i32
    return %c0_i32, %arg1 : i32, i32
  }
  func.func @transform_3(%arg0: i32, %arg1: i32, %arg2: i32) -> (i32, i32) {
    %c0_i32 = arith.constant 0 : i32
    return %arg0, %arg1 : i32, i32
  }
}

</mosaic_0001>

<bundles_post_ra>
// kernel: transformer_encoder_forward.12
= control target key start
LH: loop header
LB: loop body
LE: loop exit
PB: predicated region body
PF: predicated region fallthrough
CT: control target
= control target key end

     0   :  { %vm19_vm0 = vcmask 261120   ;;  %v138_v0 = vmov 0.0   ;;  %vm139_vm1 = vmmov 0   ;;  %vm39_vm2 = vcmask 130048   ;;  %s179_s1 = inlined_call_operand.vmem [shape: bf16[16,32], index: 1, kind: input, shape index: {}]   ;;  %s180_s0 = inlined_call_operand.vmem [shape: bf16[16,16], index: 0, kind: input, shape index: {}]   ;;  %s181_s2 = inlined_call_operand.vmem [shape: f32[1,32], index: 2, kind: input, shape index: {}]   ;;  %s182_s3 = inlined_call_operand.vmem [shape: bf16[16,32], index: 3, kind: output, shape index: {}]  }
   0x1   :  { %20 = vst.msk [vmem:[#allocation2] sm:$0xff] %vm19_vm0, %v138_v0  ;;  %21 = vst.msk [vmem:[#allocation2 + $0x8] sm:$0xff] %vm19_vm0, %v138_v0  ;;  %128 = vmatprep.subr.bf16.mxu0 %v138_v0  ;;  %v136_v1 = vld [vmem:[%s179_s1] sm:$0xff]   ;;  %130 = vmatprep.mubr.msk.bf16.mxu0 %vm139_vm1, %v138_v0  ;;  %vm111_vm3 = vcmask 257024  }
   0x2   :  { %v137_v2 = vld [vmem:[%s180_s0] sm:$0xff]   ;;  %129 = vmatpush3.bf16.msra.mxu0 %v136_v1 }
   0x3   :  { %v121_v11 = vld [vmem:[%s181_s2] ss:$0 sm:$0xff] }
   0x5   :  { %131 = vmatmul.mubr.msk.bf16.vlgmr.msra.gmra.mrb[0].mxu0 %vm39_vm2, %v137_v2 }
   0x8   :  { %v22_v3 = vld [vmem:[#allocation2] sm:$0xff]  ;;  %v23_v5 = vld [vmem:[#allocation2 + $0x8] sm:$0xff] }
  0xd8   :  { %v77_v4 = vpop.f32.mrb[0].mxu0 }
  0xd9   :  { %v84_v6 = vadd.f32 %v77_v4, %v22_v3  ;;  %v132_v7 = vpop.f32.mrb[1].mxu0 }
  0xda   :  { %v80_v8 = vpop.f32.mrb[2].mxu0 }
  0xdb   :  { %87 = vst.msk [vmem:[#allocation2] sm:$0xff] %vm19_vm0, %v84_v6  ;;  %v85_v9 = vadd.f32 %v80_v8, %v23_v5  ;;  %v133_v10 = vpop.f32.mrb[3].mxu0 }
  0xdd   :  { %88 = vst.msk [vmem:[#allocation2 + $0x8] sm:$0xff] %vm19_vm0, %v85_v9 }
  0xe2   :  { %v92_v12 = vld [vmem:[#allocation2] sm:$0xff] }
  0xe3   :  { %v101_v13 = vadd.f32 %v121_v11, %v92_v12 }
  0xe4   :  { %v93_v14 = vld [vmem:[#allocation2 + $0x8] sm:$0xff] }
  0xe5   :  { %v124_v15 = vpack.c.bf16 %v101_v13, %v101_v13  ;;  %v102_v16 = vadd.f32 %v121_v11, %v93_v14 }
  0xe7   :  { %112 = vst.msk [vmem:[%s182_s3] sm:$0xf] %vm111_vm3, %v124_v15  ;;  %v125_v17 = vpack.c.bf16 %v102_v16, %v102_v16 }
  0xe9   :  { %113 = vst.msk [vmem:[%s182_s3 + $0x4] sm:$0xf] %vm111_vm3, %v125_v17 }

// kernel: transformer_encoder_forward.13
= control target key start
LH: loop header
LB: loop body
LE: loop exit
PB: predicated region body
PF: predicated region fallthrough
CT: control target
= control target key end

     0   :  { %vm19_vm0 = vcmask 785408   ;;  %v151_v0 = vmov 0.0   ;;  %vm152_vm1 = vmmov 0   ;;  %vm47_vm2 = vcmask 261120   ;;  %s195_s1 = inlined_call_operand.vmem [shape: bf16[32,96], index: 1, kind: input, shape index: {}]   ;;  %s196_s0 = inlined_call_operand.vmem [shape: bf16[16,32], index: 0, kind: input, shape index: {}]   ;;  %s197_s2 = inlined_call_operand.vmem [shape: f32[1,96], index: 2, kind: input, shape index: {}]   ;;  %s198_s3 = inlined_call_operand.vmem [shape: bf16[16,96], index: 3, kind: output, shape index: {}]  }
   0x1   :  { %138 = vmatprep.subr.bf16.mxu0 %v151_v0  ;;  %v148_v1 = vld [vmem:[%s195_s1] sm:$0xff]   ;;  %142 = vmatprep.mubr.msk.bf16.mxu0 %vm152_vm1, %v151_v0  ;;  %20 = vst.msk [vmem:[#allocation2] sm:$0xff] %vm19_vm0, %v151_v0  ;;  %21 = vst.msk [vmem:[#allocation2 + $0x8] sm:$0xff] %vm19_vm0, %v151_v0  ;;  %v149_v2 = vld [vmem:[%s195_s1 + $0x8] sm:$0xff]   ;;  %vm119_vm3 = vcmask 781312  }
   0x2   :  { %139 = vmatpush3.bf16.msra.mxu0 %v148_v1  ;;  %v150_v3 = vld [vmem:[%s196_s0] sm:$0xff]  }
   0x3   :  { %140 = vmatprep.subr.bf16.mxu0 %v151_v0  ;;  %v130_v12 = vld [vmem:[%s197_s2] ss:$0 sm:$0xff] }
   0x6   :  { %141 = vmatpush3.bf16.msra.mxu0 %v149_v2 }
   0x8   :  { %v22_v4 = vld [vmem:[#allocation2] sm:$0xff]  ;;  %v23_v6 = vld [vmem:[#allocation2 + $0x8] sm:$0xff] }
   0x9   :  { %143 = vmatmul.mubr.msk.bf16.vlgmr.msra.gmra.mrb[0].mxu0 %vm47_vm2, %v150_v3 }
  0xdc   :  { %v85_v5 = vpop.f32.mrb[0].mxu0 }
  0xdd   :  { %v92_v7 = vadd.f32 %v85_v5, %v22_v4  ;;  %v144_v8 = vpop.f32.mrb[1].mxu0 }
  0xde   :  { %v88_v9 = vpop.f32.mrb[2].mxu0 }
  0xdf   :  { %95 = vst.msk [vmem:[#allocation2] sm:$0xff] %vm19_vm0, %v92_v7  ;;  %v93_v10 = vadd.f32 %v88_v9, %v23_v6  ;;  %v145_v11 = vpop.f32.mrb[3].mxu0 }
  0xe1   :  { %96 = vst.msk [vmem:[#allocation2 + $0x8] sm:$0xff] %vm19_vm0, %v93_v10 }
  0xe6   :  { %v100_v13 = vld [vmem:[#allocation2] sm:$0xff] }
  0xe7   :  { %v109_v14 = vadd.f32 %v130_v12, %v100_v13 }
  0xe8   :  { %v101_v15 = vld [vmem:[#allocation2 + $0x8] sm:$0xff] }
  0xe9   :  { %v133_v16 = vpack.c.bf16 %v109_v14, %v109_v14  ;;  %v110_v17 = vadd.f32 %v130_v12, %v101_v15 }
  0xeb   :  { %120 = vst.msk [vmem:[%s198_s3] sm:$0xf] %vm119_vm3, %v133_v16  ;;  %v134_v18 = vpack.c.bf16 %v110_v17, %v110_v17 }
  0xed   :  { %121 = vst.msk [vmem:[%s198_s3 + $0x4] sm:$0xf] %vm119_vm3, %v134_v18 }

// kernel: transformer_encoder_forward.14
= control target key start
LH: loop header
LB: loop body
LE: loop exit
PB: predicated region body
PF: predicated region fallthrough
CT: control target
= control target key end

     0   :  { %s641_s12 = smov 0   ;;  %s643_s13 = smov 0   ;;  %s697_s0 = inlined_call_operand.vmem [shape: bf16[16,8,4], index: 0, kind: input, shape index: {}]   ;;  %s698_s1 = inlined_call_operand.vmem [shape: bf16[16,8,4], index: 1, kind: input, shape index: {}]   ;;  %s699_s2 = inlined_call_operand.vmem [shape: bf16[16,8,4], index: 2, kind: input, shape index: {}]   ;;  %s700_s3 = inlined_call_operand.vmem [shape: bf16[16,8,4], index: 3, kind: output, shape index: {}]  }
   0x1   :  { %s645_s14 = smov 0  }
   0x2 LB: > { %s32_s15 = sadd.s32 1, %s611_s13  ;;  %p532_p0 = scmp.ge.s32.totalorder %s615_s14, 1  ;;  %s615_s14 = sphi %s645_s14, %s13_s14   ;;  %s611_s13 = sphi %s643_s13, %s702_s13   ;;  %s607_s12 = sphi %s641_s12, %s701_s12  }
   0x3   : > { %p34_p1 = scmp.ge.s32.totalorder %s32_s15, 16  ;;  %p190_p2 = scmp.lt.s32.totalorder %s615_s14, 17 }
   0x5   : > { %s704_s15 = smov (%p34_p1, %s32_s15), 0  ;;  %p191_p3 = pnand %p532_p0, %p190_p2 }
   0x6   : > { %p232_p4 = scmp.lt.s32.totalorder (!%p191_p3), %s607_s12, 15  ;;  %vm268_vm0 = vcmask (!%p191_p3), 31744   ;;  %v617_v0 = vmov (!%p191_p3), 0.0   ;;  %vm618_vm1 = vmmov (!%p191_p3), 0   ;;  %vm265_vm2 = vcmask (!%p191_p3), 7168  }
   0x7   : > { %194 = sbr.rel (%p191_p3) target bundleno = 823 (0x337), region = 32  ;;  %545 = vmatprep.subr.bf16.mxu0 (!%p191_p3), %v617_v0  ;;  %269 = vst.msk [vmem:[#allocation4] sm:$0xff] (!%p191_p3), %vm268_vm0, %v617_v0  ;;  %547 = vmatprep.mubr.msk.bf16.mxu0 (!%p191_p3), %vm618_vm1, %v617_v0  ;;  %v619_v7 = vmov (!%p191_p3), -inf   ;;  %vm323_vm3 = vcmask (!%p191_p3), 64512   ;;  %v620_v13 = vmov (!%p191_p3), 0   ;;  %vm359_vm4 = vcmask (!%p191_p3), 1043456  }
   0x8   : > { %551 = vmatprep.subr.bf16.mxu1 (!%p191_p3), %v617_v0  ;;  %553 = vmatprep.mubr.msk.bf16.mxu1 (!%p191_p3), %vm618_vm1, %v617_v0  ;;  %266 = vst.msk [vmem:[#allocation2] sm:$0xff] (!%p191_p3), %vm265_vm2, %v619_v7  ;;  %267 = vst.msk [vmem:[#allocation3] sm:$0xff] (!%p191_p3), %vm265_vm2, %v617_v0  ;;  %vm419_vm5 = vcmask (!%p191_p3), 27648  }
   0x9   : > { %585 = vset.pattern.permute.xlu0 (!%p191_p3), %v620_v13  ;;  %586 = vset.pattern.permute.xlu1 (!%p191_p3), %v620_v13 }
   0xe   : > { %s706_s12 = smov (!%p232_p4, %s607_s12), 15  ;;  %v347_v34 = vld [vmem:[#allocation4] sm:$0xff] }
   0xf   : > { %s660_s16 = sshll.u32 %s706_s12, 2  ;;  %v322_v14 = vld [vmem:[#allocation2] sm:$0xff]  ;;  %v339_v28 = vld [vmem:[#allocation3] sm:$0xff] }
  0x10   : > { %s245_s19 = scalar_lea.vmem %s698_s1, %s660_s16  ;;  %s238_s22 = scalar_lea.vmem %s697_s0, %s660_s16 }
  0x11   : > { %v274_v1 = vld [vmem:[%s245_s19] sm:$0xf]  ;;  %s252_s25 = scalar_lea.vmem %s699_s2, %s660_s16  ;;  %s259_s28 = scalar_lea.vmem %s700_s3, %s660_s16 }
  0x12   : > { %v270_v2 = vld [vmem:[%s238_s22] sm:$0xf]  ;;  %v280_v3 = vsel %vm268_vm0, %v274_v1, 0 }
  0x13   : > { %v271_v4 = vunpack.c.l.bf16 %v270_v2  ;;  %546 = vmatpush3.bf16.xpose.msra.mxu0 %v280_v3  ;;  %v355_v18 = vld [vmem:[%s252_s25] sm:$0xf] }
  0x14   : > { %v361_v19 = vsel %vm359_vm4, %v355_v18, 0 }
  0x15   : > { %v272_v5 = vmul.f32 0.5, %v271_v4  ;;  %552 = vmatpush3.bf16.msra.mxu1 %v361_v19 }
  0x17   : > { %v273_v6 = vpack.c.bf16 %v272_v5, %v272_v5 }
  0x1a   : > { %548 = vmatmul.mubr.msk.bf16.vlgmr.msra.gmra.mrb[0].mxu0 %vm268_vm0, %v273_v6 }
  0xed   : > { %v316_v8 = vpop.f32.mrb[0].mxu0 }
  0xee   : > { %v549_v9 = vpop.f32.mrb[1].mxu0  ;;  %v324_v10 = vsel %vm323_vm3, %v316_v8, -inf }
  0xef   : > { %325 = vmax.xlane.f32.xlu0 %v324_v10  ;;  %v319_v11 = vpop.f32.mrb[2].mxu0 }
  0xf0   : > { %v550_v12 = vpop.f32.mrb[3].mxu0 }
 0x17c   : > { %v326_v15 = vpop.xlane.xlu0 %325 }
 0x17d   : > { %v327_v16 = vmax.f32 %v322_v14, %v326_v15 }
 0x17f   : > { %v328_v17 = vsub.f32 %v322_v14, %v327_v16  ;;  %405 = vst.msk [vmem:[#allocation2] sm:$0xff] %vm265_vm2, %v327_v16  ;;  %333 = vperm.xlu0 %585, %v327_v16  }
 0x181   : > { %v329_v26 = vmul.f32 1.442695, %v328_v17 }
 0x1fe   : > { %v334_v20 = vpop.permute.xlu0 %333 }
 0x1ff   : > { %v336_v21 = vsub.f32 %v316_v8, %v334_v20 }
 0x201   : > { %v337_v22 = vmul.f32 1.442695, %v336_v21 }
 0x203   : > { %587 = vpow2.f32 %v337_v22 }
 0x204   : > { %589 = vpow2.f32 %v329_v26 }
 0x20d   : > { %v588_v23 = vpop.eup %587 }
 0x20e   : > { %v341_v24 = vsel %vm323_vm3, %v588_v23, 0.0  ;;  %v354_v25 = vpack.c.bf16 %v588_v23, %v588_v23  ;;  %v590_v27 = vpop.eup %589 }
 0x20f   : > { %342 = vadd.xlane.f32.xlu1 %v341_v24  ;;  %v340_v29 = vmul.f32 %v590_v27, %v339_v28 }
 0x210   : > { %554 = vmatmul.mubr.msk.bf16.vlgmr.msra.gmra.mrb[0].mxu1 %vm323_vm3, %v354_v25 }
 0x220   : > { %350 = vperm.xlu1 %586, %v590_v27  }
 0x29c   : > { %v343_v30 = vpop.xlane.xlu1 %342 }
 0x29d   : > { %v344_v31 = vadd.f32 %v343_v30, %v340_v29 }
 0x29f   : > { %346 = vst.msk [vmem:[#allocation3] sm:$0xff] %vm265_vm2, %v344_v31 }
 0x2a0   : > { %v351_v35 = vpop.permute.xlu1 %350 }
 0x2a1   : > { %v353_v36 = vmul.f32 %v351_v35, %v347_v34 }
 0x2a6   : > { %v410_v32 = vld [vmem:[#allocation3] sm:$0xff] }
 0x2a7   : > { %591 = vrcp.f32 %v410_v32 }
 0x2b1   : > { %v592_v33 = vpop.eup %591 }
 0x2b2   : > { %414 = vperm.xlu1 %586, %v592_v33  }
 0x2e3   : > { %v397_v37 = vpop.f32.mrb[0].mxu1 }
 0x2e4   : > { %v403_v38 = vadd.f32 %v397_v37, %v353_v36  ;;  %v555_v39 = vpop.f32.mrb[1].mxu1 }
 0x2e5   : > { %v400_v40 = vpop.f32.mrb[2].mxu1 }
 0x2e6   : > { %404 = vst.msk [vmem:[#allocation4] sm:$0xff] %vm268_vm0, %v403_v38  ;;  %v556_v41 = vpop.f32.mrb[3].mxu1 }
 0x2ed   : > { %v409_v42 = vld [vmem:[#allocation4] sm:$0xff] }
 0x331   : > { %v415_v43 = vpop.permute.xlu1 %414 }
 0x332   : > { %v417_v44 = vmul.f32 %v415_v43, %v409_v42 }
 0x334   : > { %v418_v45 = vpack.c.bf16 %v417_v44, %v417_v44 }
 0x336   : > { %420 = vst.msk [vmem:[%s259_s28] sm:$0xf] %vm419_vm5, %v418_v45 }
 0x337 PF: > { %s13_s14 = sadd.s32 1, %s615_s14   ;;  %s701_s12 = smov %s611_s13 }
 0x338   : > { %p10_p5 = scmp.ge.s32.totalorder %s13_s14, 18   ;;  %s702_s13 = smov %s704_s15 }
 0x33a   :  { %12 = sbr.rel (!%p10_p5) target bundleno = 2 (0x2), region = 76 }

// kernel: transformer_encoder_forward.16
= control target key start
LH: loop header
LB: loop body
LE: loop exit
PB: predicated region body
PF: predicated region fallthrough
CT: control target
= control target key end

     0   :  { %v175_v0 = vmov 0.0   ;;  %vm176_vm0 = vmmov 0   ;;  %vm46_vm1 = vcmask 261120   ;;  %s212_s1 = inlined_call_operand.vmem [shape: bf16[32,128], index: 1, kind: input, shape index: {}]   ;;  %s213_s0 = inlined_call_operand.vmem [shape: bf16[16,32], index: 0, kind: input, shape index: {}]   ;;  %s214_s2 = inlined_call_operand.vmem [shape: f32[1,128], index: 2, kind: input, shape index: {}]   ;;  %s215_s3 = inlined_call_operand.vmem [shape: bf16[16,128], index: 3, kind: output, shape index: {}]  }
   0x1   :  { %158 = vmatprep.subr.bf16.mxu0 %v175_v0  ;;  %v168_v1 = vld [vmem:[%s212_s1] sm:$0xff]   ;;  %162 = vmatprep.mubr.msk.bf16.mxu0 %vm176_vm0, %v175_v0  ;;  %v169_v2 = vld [vmem:[%s212_s1 + $0x8] sm:$0xff]  }
   0x2   :  { %159 = vmatpush3.bf16.msra.mxu0 %v168_v1  ;;  %v170_v3 = vld [vmem:[%s213_s0] sm:$0xff]  }
   0x3   :  { %160 = vmatprep.subr.bf16.mxu0 %v175_v0  ;;  %v145_v4 = vld [vmem:[%s214_s2] ss:$0 sm:$0xff] }
   0x6   :  { %161 = vmatpush3.bf16.msra.mxu0 %v169_v2 }
   0x9   :  { %163 = vmatmul.mubr.msk.bf16.vlgmr.msra.gmra.mrb[0].mxu0 %vm46_vm1, %v170_v3 }
  0xdc   :  { %v84_v5 = vpop.f32.mrb[0].mxu0 }
  0xdd   :  { %v107_v6 = vadd.f32 %v145_v4, %v84_v5  ;;  %v164_v7 = vpop.f32.mrb[1].mxu0 }
  0xde   :  { %v87_v8 = vpop.f32.mrb[2].mxu0 }
  0xdf   :  { %v111_v9 = vmul.f32 0.044715, %v107_v6  ;;  %v108_v10 = vadd.f32 %v145_v4, %v87_v8  ;;  %v165_v11 = vpop.f32.mrb[3].mxu0  ;;  %v109_v24 = vmul.f32 0.5, %v107_v6 }
  0xe1   :  { %v113_v12 = vmul.f32 %v111_v9, %v107_v6  ;;  %v112_v13 = vmul.f32 0.044715, %v108_v10  ;;  %v110_v25 = vmul.f32 0.5, %v108_v10 }
  0xe3   :  { %v115_v14 = vmul.f32 %v113_v12, %v107_v6  ;;  %v114_v15 = vmul.f32 %v112_v13, %v108_v10 }
  0xe5   :  { %v117_v16 = vadd.f32 %v115_v14, %v107_v6  ;;  %v116_v17 = vmul.f32 %v114_v15, %v108_v10 }
  0xe7   :  { %v119_v18 = vmul.f32 0.7978846, %v117_v16  ;;  %v118_v19 = vadd.f32 %v116_v17, %v108_v10 }
  0xe9   :  { %171 = vtanh.f32 %v119_v18  ;;  %v120_v20 = vmul.f32 0.7978846, %v118_v19 }
  0xeb   :  { %173 = vtanh.f32 %v120_v20 }
  0xf3   :  { %v172_v21 = vpop.eup %171 }
  0xf4   :  { %v123_v22 = vadd.f32 1.0, %v172_v21 }
  0xf5   :  { %v174_v23 = vpop.eup %173 }
  0xf6   :  { %v124_v26 = vadd.f32 1.0, %v174_v23  ;;  %v125_v27 = vmul.f32 %v123_v22, %v109_v24 }
  0xf8   :  { %v126_v28 = vmul.f32 %v124_v26, %v110_v25 }
  0xfa   :  { %v153_v29 = vpack.c.bf16 %v126_v28, %v125_v27 }
  0xfc   :  { %154 = vst [vmem:[%s215_s3] sm:$0xff] %v153_v29  }

// kernel: transformer_encoder_forward.15
= control target key start
LH: loop header
LB: loop body
LE: loop exit
PB: predicated region body
PF: predicated region fallthrough
CT: control target
= control target key end

     0   :  { %vm28_vm0 = vcmask 261120   ;;  %v220_v0 = vmov 0.0   ;;  %vm221_vm1 = vmmov 0   ;;  %vm178_vm2 = vcmask 257024   ;;  %s293_s1 = inlined_call_operand.vmem [shape: bf16[32,32], index: 1, kind: input, shape index: {}]   ;;  %s294_s0 = inlined_call_operand.vmem [shape: bf16[16,32], index: 0, kind: input, shape index: {}]   ;;  %s295_s3 = inlined_call_operand.vmem [shape: bf16[16,32], index: 3, kind: input, shape index: {}]   ;;  %s296_s2 = inlined_call_operand.vmem [shape: f32[1,32], index: 2, kind: input, shape index: {}]   ;;  %s297_s4 = inlined_call_operand.vmem [shape: f32[1,32], index: 4, kind: input, shape index: {}]   ;;  %s298_s5 = inlined_call_operand.vmem [shape: f32[1,32], index: 5, kind: input, shape index: {}]   ;;  %s299_s6 = inlined_call_operand.vmem [shape: bf16[16,32], index: 6, kind: output, shape index: {}]  }
   0x1   :  { %203 = vmatprep.subr.bf16.mxu0 %v220_v0  ;;  %v213_v1 = vld [vmem:[%s293_s1] sm:$0xff]   ;;  %207 = vmatprep.mubr.msk.bf16.mxu0 %vm221_vm1, %v220_v0  ;;  %29 = vst.msk [vmem:[#allocation2] sm:$0xff] %vm28_vm0, %v220_v0  ;;  %30 = vst.msk [vmem:[#allocation2 + $0x8] sm:$0xff] %vm28_vm0, %v220_v0  ;;  %v214_v2 = vld [vmem:[%s293_s1 + $0x8] sm:$0xff]  }
   0x2   :  { %204 = vmatpush3.bf16.msra.mxu0 %v213_v1  ;;  %v215_v3 = vld [vmem:[%s294_s0] sm:$0xff]  }
   0x3   :  { %205 = vmatprep.subr.bf16.mxu0 %v220_v0  ;;  %v197_v12 = vld [vmem:[%s295_s3] sm:$0xff]  }
   0x4   :  { %v189_v13 = vld [vmem:[%s296_s2] ss:$0 sm:$0xff]  ;;  %v198_v14 = vunpack.c.l.bf16 %v197_v12  ;;  %v199_v17 = vunpack.c.h.bf16 %v197_v12 }
   0x5   :  { %v190_v41 = vld [vmem:[%s297_s4] ss:$0 sm:$0xff] }
   0x6   :  { %206 = vmatpush3.bf16.msra.mxu0 %v214_v2  ;;  %v191_v43 = vld [vmem:[%s298_s5] ss:$0 sm:$0xff] }
   0x8   :  { %v31_v4 = vld [vmem:[#allocation2] sm:$0xff]  ;;  %v32_v6 = vld [vmem:[#allocation2 + $0x8] sm:$0xff] }
   0x9   :  { %208 = vmatmul.mubr.msk.bf16.vlgmr.msra.gmra.mrb[0].mxu0 %vm28_vm0, %v215_v3 }
  0xdc   :  { %v94_v5 = vpop.f32.mrb[0].mxu0 }
  0xdd   :  { %v101_v7 = vadd.f32 %v94_v5, %v31_v4  ;;  %v209_v8 = vpop.f32.mrb[1].mxu0 }
  0xde   :  { %v97_v9 = vpop.f32.mrb[2].mxu0 }
  0xdf   :  { %103 = vst.msk [vmem:[#allocation2] sm:$0xff] %vm28_vm0, %v101_v7  ;;  %v102_v10 = vadd.f32 %v97_v9, %v32_v6  ;;  %v210_v11 = vpop.f32.mrb[3].mxu0 }
  0xe1   :  { %104 = vst.msk [vmem:[#allocation2 + $0x8] sm:$0xff] %vm28_vm0, %v102_v10 }
  0xe6   :  { %v108_v15 = vld [vmem:[#allocation2] sm:$0xff] }
  0xe7   :  { %v117_v16 = vadd.f32 %v189_v13, %v108_v15 }
  0xe8   :  { %v109_v18 = vld [vmem:[#allocation2 + $0x8] sm:$0xff] }
  0xe9   :  { %v123_v19 = vadd.f32 %v198_v14, %v117_v16  ;;  %v118_v20 = vadd.f32 %v189_v13, %v109_v18 }
  0xeb   :  { %v125_v21 = vsel %vm28_vm0, %v123_v19, 0.0  ;;  %v124_v22 = vadd.f32 %v199_v17, %v118_v20 }
  0xec   :  { %126 = vadd.xlane.f32.xlu0 %v125_v21 }
  0xed   :  { %v128_v23 = vsel %vm28_vm0, %v124_v22, 0.0 }
  0xf0   :  { %129 = vadd.xlane.f32.xlu0 %v128_v23 }
 0x179   :  { %v127_v24 = vpop.xlane.xlu0 %126 }
 0x17a   :  { %v132_v25 = vmul.f32 0.03125, %v127_v24 }
 0x17c   :  { %v134_v26 = vsub.f32 %v123_v19, %v132_v25 }
 0x17d   :  { %v130_v27 = vpop.xlane.xlu0 %129 }
 0x17e   :  { %v133_v28 = vmul.f32 0.03125, %v130_v27  ;;  %v136_v29 = vmul.f32 %v134_v26, %v134_v26 }
 0x180   :  { %v135_v30 = vsub.f32 %v124_v22, %v133_v28  ;;  %v138_v31 = vsel %vm28_vm0, %v136_v29, 0.0 }
 0x181   :  { %139 = vadd.xlane.f32.xlu1 %v138_v31 }
 0x182   :  { %v137_v32 = vmul.f32 %v135_v30, %v135_v30 }
 0x184   :  { %v141_v33 = vsel %vm28_vm0, %v137_v32, 0.0 }
 0x185   :  { %142 = vadd.xlane.f32.xlu1 %v141_v33 }
 0x20e   :  { %v140_v34 = vpop.xlane.xlu1 %139 }
 0x20f   :  { %v144_v35 = vmul.f32 0.03125, %v140_v34 }
 0x211   :  { %v146_v36 = vadd.f32 1e-05, %v144_v35 }
 0x212   :  { %v143_v37 = vpop.xlane.xlu1 %142 }
 0x213   :  { %216 = vrsqrt.f32 %v146_v36  ;;  %v145_v38 = vmul.f32 0.03125, %v143_v37 }
 0x215   :  { %v147_v39 = vadd.f32 1e-05, %v145_v38 }
 0x217   :  { %218 = vrsqrt.f32 %v147_v39 }
 0x21d   :  { %v217_v40 = vpop.eup %216 }
 0x21e   :  { %v150_v42 = vmul.f32 %v217_v40, %v134_v26 }
 0x220   :  { %v159_v44 = vmul.f32 %v190_v41, %v150_v42 }
 0x221   :  { %v219_v45 = vpop.eup %218 }
 0x222   :  { %v168_v46 = vadd.f32 %v191_v43, %v159_v44  ;;  %v151_v47 = vmul.f32 %v219_v45, %v135_v30 }
 0x224   :  { %v194_v48 = vpack.c.bf16 %v168_v46, %v168_v46  ;;  %v160_v49 = vmul.f32 %v190_v41, %v151_v47 }
 0x226   :  { %179 = vst.msk [vmem:[%s299_s6] sm:$0xf] %vm178_vm2, %v194_v48  ;;  %v169_v50 = vadd.f32 %v191_v43, %v160_v49 }
 0x228   :  { %v195_v51 = vpack.c.bf16 %v169_v50, %v169_v50 }
 0x22a   :  { %180 = vst.msk [vmem:[%s299_s6 + $0x4] sm:$0xf] %vm178_vm2, %v195_v51 }

// kernel: transformer_encoder_forward.17
= control target key start
LH: loop header
LB: loop body
LE: loop exit
PB: predicated region body
PF: predicated region fallthrough
CT: control target
= control target key end

     0   :  { %vm28_vm0 = vcmask 261120   ;;  %v295_v0 = vmov 0.0   ;;  %vm296_vm1 = vmmov 0   ;;  %vm224_vm2 = vcmask 257024   ;;  %s385_s1 = inlined_call_operand.vmem [shape: bf16[128,32], index: 1, kind: input, shape index: {}]   ;;  %s386_s0 = inlined_call_operand.vmem [shape: bf16[16,128], index: 0, kind: input, shape index: {}]   ;;  %s387_s3 = inlined_call_operand.vmem [shape: bf16[16,32], index: 3, kind: input, shape index: {}]   ;;  %s388_s2 = inlined_call_operand.vmem [shape: f32[1,32], index: 2, kind: input, shape index: {}]   ;;  %s389_s4 = inlined_call_operand.vmem [shape: f32[1,32], index: 4, kind: input, shape index: {}]   ;;  %s390_s5 = inlined_call_operand.vmem [shape: f32[1,32], index: 5, kind: input, shape index: {}]   ;;  %s391_s6 = inlined_call_operand.vmem [shape: bf16[16,32], index: 6, kind: output, shape index: {}]  }
   0x1   :  { %260 = vmatprep.subr.bf16.mxu0 %v295_v0  ;;  %v282_v1 = vld [vmem:[%s385_s1] sm:$0xff]   ;;  %276 = vmatprep.mubr.msk.bf16.mxu0 %vm296_vm1, %v295_v0  ;;  %29 = vst.msk [vmem:[#allocation2] sm:$0xff] %vm28_vm0, %v295_v0  ;;  %30 = vst.msk [vmem:[#allocation2 + $0x8] sm:$0xff] %vm28_vm0, %v295_v0  ;;  %v283_v2 = vld [vmem:[%s385_s1 + $0x8] sm:$0xff]  }
   0x2   :  { %261 = vmatpush3.bf16.msra.mxu0 %v282_v1  ;;  %v284_v3 = vld [vmem:[%s385_s1 + $0x10] sm:$0xff]   ;;  %v285_v4 = vld [vmem:[%s385_s1 + $0x18] sm:$0xff]   ;;  %v286_v5 = vld [vmem:[%s385_s1 + $0x20] sm:$0xff]  }
   0x3   :  { %262 = vmatprep.subr.bf16.mxu0 %v295_v0  ;;  %v287_v6 = vld [vmem:[%s385_s1 + $0x28] sm:$0xff]   ;;  %v288_v7 = vld [vmem:[%s385_s1 + $0x30] sm:$0xff]   ;;  %v289_v8 = vld [vmem:[%s385_s1 + $0x38] sm:$0xff]  }
   0x4   :  { %v290_v9 = vld [vmem:[%s386_s0] sm:$0xff]  }
   0x5   :  { %v248_v18 = vld [vmem:[%s387_s3] sm:$0xff]  }
   0x6   :  { %263 = vmatpush3.bf16.msra.mxu0 %v283_v2  ;;  %v240_v19 = vld [vmem:[%s388_s2] ss:$0 sm:$0xff]  ;;  %v249_v20 = vunpack.c.l.bf16 %v248_v18  ;;  %v250_v23 = vunpack.c.h.bf16 %v248_v18 }
   0x7   :  { %264 = vmatprep.subr.bf16.mxu0 %v295_v0  ;;  %v241_v47 = vld [vmem:[%s389_s4] ss:$0 sm:$0xff] }
   0x8   :  { %v31_v10 = vld [vmem:[#allocation2] sm:$0xff]  ;;  %v32_v12 = vld [vmem:[#allocation2 + $0x8] sm:$0xff] }
   0x9   :  { %v242_v49 = vld [vmem:[%s390_s5] ss:$0 sm:$0xff] }
   0xa   :  { %265 = vmatpush3.bf16.msra.mxu0 %v284_v3 }
   0xb   :  { %266 = vmatprep.subr.bf16.mxu0 %v295_v0 }
   0xe   :  { %267 = vmatpush3.bf16.msra.mxu0 %v285_v4 }
   0xf   :  { %268 = vmatprep.subr.bf16.mxu0 %v295_v0 }
  0x12   :  { %269 = vmatpush3.bf16.msra.mxu0 %v286_v5 }
  0x13   :  { %270 = vmatprep.subr.bf16.mxu0 %v295_v0 }
  0x16   :  { %271 = vmatpush3.bf16.msra.mxu0 %v287_v6 }
  0x17   :  { %272 = vmatprep.subr.bf16.mxu0 %v295_v0 }
  0x1a   :  { %273 = vmatpush3.bf16.msra.mxu0 %v288_v7 }
  0x1b   :  { %274 = vmatprep.subr.bf16.mxu0 %v295_v0 }
  0x1e   :  { %275 = vmatpush3.bf16.msra.mxu0 %v289_v8 }
  0x21   :  { %277 = vmatmul.mubr.bf16.vlgmr.msra.gmra.mrb[0].mxu0 %v290_v9 }
  0xf4   :  { %v139_v11 = vpop.f32.mrb[0].mxu0 }
  0xf5   :  { %v146_v13 = vadd.f32 %v139_v11, %v31_v10  ;;  %v278_v14 = vpop.f32.mrb[1].mxu0 }
  0xf6   :  { %v142_v15 = vpop.f32.mrb[2].mxu0 }
  0xf7   :  { %149 = vst.msk [vmem:[#allocation2] sm:$0xff] %vm28_vm0, %v146_v13  ;;  %v147_v16 = vadd.f32 %v142_v15, %v32_v12  ;;  %v279_v17 = vpop.f32.mrb[3].mxu0 }
  0xf9   :  { %150 = vst.msk [vmem:[#allocation2 + $0x8] sm:$0xff] %vm28_vm0, %v147_v16 }
  0xfe   :  { %v154_v21 = vld [vmem:[#allocation2] sm:$0xff] }
  0xff   :  { %v163_v22 = vadd.f32 %v240_v19, %v154_v21 }
 0x100   :  { %v155_v24 = vld [vmem:[#allocation2 + $0x8] sm:$0xff] }
 0x101   :  { %v169_v25 = vadd.f32 %v249_v20, %v163_v22  ;;  %v164_v26 = vadd.f32 %v240_v19, %v155_v24 }
 0x103   :  { %v171_v27 = vsel %vm28_vm0, %v169_v25, 0.0  ;;  %v170_v28 = vadd.f32 %v250_v23, %v164_v26 }
 0x104   :  { %172 = vadd.xlane.f32.xlu0 %v171_v27 }
 0x105   :  { %v174_v29 = vsel %vm28_vm0, %v170_v28, 0.0 }
 0x108   :  { %175 = vadd.xlane.f32.xlu0 %v174_v29 }
 0x191   :  { %v173_v30 = vpop.xlane.xlu0 %172 }
 0x192   :  { %v178_v31 = vmul.f32 0.03125, %v173_v30 }
 0x194   :  { %v180_v32 = vsub.f32 %v169_v25, %v178_v31 }
 0x195   :  { %v176_v33 = vpop.xlane.xlu0 %175 }
 0x196   :  { %v179_v34 = vmul.f32 0.03125, %v176_v33  ;;  %v182_v35 = vmul.f32 %v180_v32, %v180_v32 }
 0x198   :  { %v181_v36 = vsub.f32 %v170_v28, %v179_v34  ;;  %v184_v37 = vsel %vm28_vm0, %v182_v35, 0.0 }
 0x199   :  { %185 = vadd.xlane.f32.xlu1 %v184_v37 }
 0x19a   :  { %v183_v38 = vmul.f32 %v181_v36, %v181_v36 }
 0x19c   :  { %v187_v39 = vsel %vm28_vm0, %v183_v38, 0.0 }
 0x19d   :  { %188 = vadd.xlane.f32.xlu1 %v187_v39 }
 0x226   :  { %v186_v40 = vpop.xlane.xlu1 %185 }
 0x227   :  { %v190_v41 = vmul.f32 0.03125, %v186_v40 }
 0x229   :  { %v192_v42 = vadd.f32 1e-05, %v190_v41 }
 0x22a   :  { %v189_v43 = vpop.xlane.xlu1 %188 }
 0x22b   :  { %291 = vrsqrt.f32 %v192_v42  ;;  %v191_v44 = vmul.f32 0.03125, %v189_v43 }
 0x22d   :  { %v193_v45 = vadd.f32 1e-05, %v191_v44 }
 0x22f   :  { %293 = vrsqrt.f32 %v193_v45 }
 0x235   :  { %v292_v46 = vpop.eup %291 }
 0x236   :  { %v196_v48 = vmul.f32 %v292_v46, %v180_v32 }
 0x238   :  { %v205_v50 = vmul.f32 %v241_v47, %v196_v48 }
 0x239   :  { %v294_v51 = vpop.eup %293 }
 0x23a   :  { %v214_v52 = vadd.f32 %v242_v49, %v205_v50  ;;  %v197_v53 = vmul.f32 %v294_v51, %v181_v36 }
 0x23c   :  { %v245_v54 = vpack.c.bf16 %v214_v52, %v214_v52  ;;  %v206_v55 = vmul.f32 %v241_v47, %v197_v53 }
 0x23e   :  { %225 = vst.msk [vmem:[%s391_s6] sm:$0xf] %vm224_vm2, %v245_v54  ;;  %v215_v56 = vadd.f32 %v242_v49, %v206_v55 }
 0x240   :  { %v246_v57 = vpack.c.bf16 %v215_v56, %v215_v56 }
 0x242   :  { %226 = vst.msk [vmem:[%s391_s6 + $0x4] sm:$0xf] %vm224_vm2, %v246_v57 }

// kernel: transformer_encoder_forward.23
= control target key start
LH: loop header
LB: loop body
LE: loop exit
PB: predicated region body
PF: predicated region fallthrough
CT: control target
= control target key end

     0   :  { %v178_v1 = vmov 0.0   ;;  %vm179_vm0 = vmmov 0   ;;  %vm20_vm1 = vcmask 195584   ;;  %s233_s0 = inlined_call_operand.vmem [shape: bf16[16,32], index: 0, kind: input, shape index: {}]   ;;  %s234_s1 = inlined_call_operand.vmem [shape: bf16[32,24], index: 1, kind: input, shape index: {}]   ;;  %s235_s2 = inlined_call_operand.vmem [shape: f32[1,24], index: 2, kind: input, shape index: {}]   ;;  %s236_s3 = inlined_call_operand.hbm [shape: f32[16,24], index: 3, kind: output, shape index: {}]  }
   0x1   :  { %v151_v0 = vld [vmem:[%s234_s1] sm:$0xff]   ;;  %138 = vmatprep.subr.bf16.mxu0 %v178_v1  ;;  %v152_v2 = vld [vmem:[%s234_s1 + $0x8] sm:$0xff]   ;;  %142 = vmatprep.mubr.msk.bf16.mxu0 %vm179_vm0, %v178_v1 }
   0x2   :  { %139 = vmatpush3.bf16.msra.mxu0 %v151_v0 }
   0x3   :  { %140 = vmatprep.subr.bf16.mxu0 %v178_v1 }
   0x4   :  { %8 = vsyncpa [#allocation4], 0  ;;  %21 = vst.msk [vmem:[#allocation2] sm:$0xff] %vm20_vm1, %v178_v1  ;;  %v153_v3 = vld [vmem:[%s233_s0] sm:$0xff]   ;;  %vm48_vm2 = vcmask 261120   ;;  %s180_s0 = smov [#allocation3]  }
   0x5   :  { %22 = vst.msk [vmem:[#allocation2 + $0x8] sm:$0xff] %vm20_vm1, %v178_v1  ;;  %v134_v12 = vld [vmem:[%s235_s2] ss:$0 sm:$0xff]  ;;  %s119_s19 = sshll.u32 %s180_s0, 4  ;;  %s120_s19 = int_to_ptr.vmem [resolvable:$true] %s119_s19 }
   0x6   :  { %141 = vmatpush3.bf16.msra.mxu0 %v152_v2  ;;  %s154_s20 = scalar_lea.vmem %s120_s19, 256  ;;  %p159_p1 = scmp.lt.s32.totalorder %s120_s19, %s120_s19 }
   0x7   :  { %p155_p0 = scmp.ne.s32.totalorder %s120_s19, %s154_s20  ;;  %p160_p2 = scmp.lt.s32.totalorder %s154_s20, %s154_s20 }
   0x9   :  { %143 = vmatmul.mubr.msk.bf16.vlgmr.msra.gmra.mrb[0].mxu0 %vm48_vm2, %v153_v3  ;;  %p161_p3 = por %p160_p2, %p159_p1 }
   0xb   :  { %v23_v4 = vld [vmem:[#allocation2] sm:$0xff]  ;;  %p162_p4 = pnand %p161_p3, %p155_p0 }
   0xc   :  { %v24_v6 = vld [vmem:[#allocation2 + $0x8] sm:$0xff] }
  0xdc   :  { %v86_v5 = vpop.f32.mrb[0].mxu0 }
  0xdd   :  { %v93_v7 = vadd.f32 %v86_v5, %v23_v4  ;;  %v144_v8 = vpop.f32.mrb[1].mxu0 }
  0xde   :  { %v89_v9 = vpop.f32.mrb[2].mxu0 }
  0xdf   :  { %96 = vst.msk [vmem:[#allocation2] sm:$0xff] %vm20_vm1, %v93_v7  ;;  %v94_v10 = vadd.f32 %v89_v9, %v24_v6  ;;  %v145_v11 = vpop.f32.mrb[3].mxu0 }
  0xe1   :  { %97 = vst.msk [vmem:[#allocation2 + $0x8] sm:$0xff] %vm20_vm1, %v94_v10 }
  0xe6   :  { %v101_v13 = vld [vmem:[#allocation2] sm:$0xff] }
  0xe7   :  { %v110_v14 = vadd.f32 %v134_v12, %v101_v13 }
  0xe8   :  { %v102_v15 = vld [vmem:[#allocation2 + $0x8] sm:$0xff] }
  0xe9   :  { %v111_v16 = vadd.f32 %v134_v12, %v102_v15  ;;  %112 = vst.msk [vmem:[#allocation3] sm:$0xff] %vm20_vm1, %v110_v14 }
  0xeb   :  { %113 = vst.msk [vmem:[#allocation3 + $0x8] sm:$0xff] %vm20_vm1, %v111_v16 }
  0xec   :  { %165 = shalt.err (!%p162_p4)
}
  0xed   :  { %s166_s22 = scalar_lea.hbm %s236_s3, 256 }
  0xee   :  { %p167_p5 = scmp.ne.s32.totalorder %s236_s3, %s166_s22  ;;  %p170_p6 = scmp.lt.u32.totalorder %s166_s22, %s236_s3 }
  0xf0   :  { %p172_p7 = pnand %p170_p6, %p167_p5 }
  0xf2   :  { %175 = shalt.err (!%p172_p7)
}
  0xf3   :  { %s181_s27 = smov 128   ;;  %s182_s28 = smov 8  }
  0xf4   :  { %125 = dma.vmem_to_hbm [thread:$0]  %s120_s19, 256, %s236_s3, [#allocation4], %s181_s27, %s181_s27, %s182_s28  }
  0xf5   :  { %176 = dma.done.wait [#allocation4], 256  }
  0xf6   :  { %177 = vsyncadd [#allocation4], 4294967040 }
  0xf7   :  { %129 = vsyncpa [#allocation4], 1 }

</bundles_post_ra>
